<compile_context>
chip_gen: v7x
topology: tpu7x:2x2x1
jax: 0.10.0
libtpu: 0.0.40
codegen_flags: <defaults>
</compile_context>

<pallas_src>
import math

import jax
import jax.numpy as jnp
from jax.experimental import pallas as pl
from jax.experimental.pallas import tpu as pltpu

HIDDEN = 128  # mapping-network hidden width (fixed by the module, lane aligned)


def _round_up(n, m):
    return (n + m - 1) // m * m


def _mish(x):
    """Mish(x) = x * tanh(softplus(x)) with a single EUP transcendental.

    With u = e^x and t = e^{-|x|}:
      tanh(softplus(x)) = (u^2 + 2u) / (u^2 + 2u + 2)
        x >= 0 : divide by u^2 -> (1 + 2t) / (1 + 2t + 2t^2)
        x <  0 : u == t        -> (t^2 + 2t) / (t^2 + 2t + 2)
    The divide goes through the approximate EUP reciprocal.
    """
    t = jnp.exp(-jnp.abs(x))
    pos = x >= 0
    num = jnp.where(pos, 1.0 + 2.0 * t, t * (t + 2.0))
    den = num + 2.0 * jnp.where(pos, t * t, 1.0)
    return x * num * pl.reciprocal(den, approx=True)


# ---------------------------------------------------------------------------
# Kernels
# ---------------------------------------------------------------------------
def _mapping_kernel_fused(z_ref, w0_ref, b0_ref, ws_ref, bs_ref,
                          wu0_ref, bu0_ref, wu_ref, bu_ref, wf_ref, bf_ref,
                          o_ref):
    """Fully fused forward; per-domain branches merged into block-diag matmuls.

    z_ref : (TB, latent)        bf16
    w0/b0 : (latent,128)/(1,128)          shared layer 0
    ws/bs : (3,128,128)/(3,1,128)         shared layers 1..3
    wu0/bu0: (128, D*128)/(1, D*128)      unshared layer 0, concatenated over N
    wu/bu : (2, D*128, D*128)/(2,1,D*128) unshared layers 1..2, block-diagonal
    wf/bf : (D*128, dout_pad)/(1,dout_pad) block-diagonal style heads (zero pad)
    o_ref : (TB, dout_pad)      f32       packed (domain, style) output
    """
    h = _mish(jnp.dot(z_ref[...], w0_ref[...],
                      preferred_element_type=jnp.float32) + b0_ref[...])
    for l in range(ws_ref.shape[0]):
        h = _mish(jnp.dot(h.astype(jnp.bfloat16), ws_ref[l],
                          preferred_element_type=jnp.float32) + bs_ref[l])
    h = _mish(jnp.dot(h.astype(jnp.bfloat16), wu0_ref[...],
                      preferred_element_type=jnp.float32) + bu0_ref[...])
    for l in range(wu_ref.shape[0]):
        h = _mish(jnp.dot(h.astype(jnp.bfloat16), wu_ref[l],
                          preferred_element_type=jnp.float32) + bu_ref[l])
    # Single head matmul writes the full lane-dense output block.
    o_ref[...] = jnp.dot(h.astype(jnp.bfloat16), wf_ref[...],
                         preferred_element_type=jnp.float32) + bf_ref[...]


def _mapping_kernel_per_domain(z_ref, w0_ref, b0_ref, ws_ref, bs_ref,
                               wu_ref, bu_ref, wf_ref, bf_ref, o_ref):
    """Per-domain 128-wide path (preferred on v5e: native 128-wide MXU).

    wu/bu : (D,3,128,128)/(D,3,1,128)   unshared hidden layers
    wf/bf : (D,128,S)/(D,1,S)           per-domain style heads
    o_ref : (TB, round_up(D*S,128)) f32
    """
    h = _mish(jnp.dot(z_ref[...], w0_ref[...],
                      preferred_element_type=jnp.float32) + b0_ref[...])
    for l in range(ws_ref.shape[0]):
        h = _mish(jnp.dot(h.astype(jnp.bfloat16), ws_ref[l],
                          preferred_element_type=jnp.float32) + bs_ref[l])
    num_domains, num_hidden = wu_ref.shape[0], wu_ref.shape[1]
    style_dim = wf_ref.shape[-1]
    if num_domains * style_dim < o_ref.shape[-1]:
        o_ref[...] = jnp.zeros_like(o_ref)  # clear padded lanes (static branch)
    for d in range(num_domains):
        hd = h
        for l in range(num_hidden):
            hd = _mish(jnp.dot(hd.astype(jnp.bfloat16), wu_ref[d, l],
                               preferred_element_type=jnp.float32) + bu_ref[d, l])
        o_ref[:, d * style_dim:(d + 1) * style_dim] = (
            jnp.dot(hd.astype(jnp.bfloat16), wf_ref[d],
                    preferred_element_type=jnp.float32) + bf_ref[d])


# ---------------------------------------------------------------------------
# One-time parameter packing (outside the forward path)
# ---------------------------------------------------------------------------
def _pack_shared(shared):
    w0 = shared[0][0].astype(jnp.bfloat16)                       # (latent, 128)
    b0 = shared[0][1].reshape(1, -1).astype(jnp.float32)
    ws = jnp.stack([w for w, _ in shared[1:]]).astype(jnp.bfloat16)   # (3,128,128)
    bs = jnp.stack([b.reshape(1, -1) for _, b in shared[1:]]
                   ).astype(jnp.float32)                              # (3,1,128)
    return w0, b0, ws, bs


def pack_params_fused(params, dout_pad):
    shared, unshared = params["shared"], params["unshared"]
    w0, b0, ws, bs = _pack_shared(shared)

    D, H = len(unshared), HIDDEN
    S = unshared[0][-1][0].shape[-1]
    n_hidden = len(unshared[0]) - 1          # 3 hidden Linear+Mish per branch
    DH = D * H

    # Unshared layer 0: shared input -> concatenate weights along N.
    wu0 = jnp.concatenate([lyr[0][0] for lyr in unshared], axis=1
                          ).astype(jnp.bfloat16)                       # (128, DH)
    bu0 = jnp.concatenate([lyr[0][1] for lyr in unshared]
                          ).reshape(1, DH).astype(jnp.float32)

    # Unshared layers 1..2: block-diagonal (DH, DH).
    wu_l, bu_l = [], []
    for l in range(1, n_hidden):
        blk = jnp.zeros((DH, DH), jnp.float32)
        for d, lyr in enumerate(unshared):
            blk = blk.at[d * H:(d + 1) * H, d * H:(d + 1) * H].set(lyr[l][0])
        wu_l.append(blk.astype(jnp.bfloat16))
        bu_l.append(jnp.concatenate([lyr[l][1] for lyr in unshared]
                                    ).reshape(1, DH).astype(jnp.float32))
    wu = jnp.stack(wu_l)                                               # (2,DH,DH)
    bu = jnp.stack(bu_l)                                               # (2,1,DH)

    # Style heads: block-diagonal, zero-padded to the lane-dense output width.
    wf = jnp.zeros((DH, dout_pad), jnp.float32)
    bf = jnp.zeros((1, dout_pad), jnp.float32)
    for d, lyr in enumerate(unshared):
        wh, bh = lyr[-1]
        wf = wf.at[d * H:(d + 1) * H, d * S:(d + 1) * S].set(wh)
        bf = bf.at[0, d * S:(d + 1) * S].set(bh)
    wf = wf.astype(jnp.bfloat16)

    return (w0, b0, ws, bs, wu0, bu0, wu, bu, wf, bf)


def pack_params_per_domain(params):
    shared, unshared = params["shared"], params["unshared"]
    w0, b0, ws, bs = _pack_shared(shared)
    n_hidden = len(unshared[0]) - 1
    wu = jnp.stack([jnp.stack([lyr[l][0] for l in range(n_hidden)])
                    for lyr in unshared]).astype(jnp.bfloat16)         # (D,3,128,128)
    bu = jnp.stack([jnp.stack([lyr[l][1].reshape(1, -1) for l in range(n_hidden)])
                    for lyr in unshared]).astype(jnp.float32)          # (D,3,1,128)
    wf = jnp.stack([lyr[-1][0] for lyr in unshared]).astype(jnp.bfloat16)  # (D,128,S)
    bf = jnp.stack([lyr[-1][1].reshape(1, -1) for lyr in unshared]
                   ).astype(jnp.float32)                               # (D,1,S)
    return (w0, b0, ws, bs, wu, bu, wf, bf)


# ---------------------------------------------------------------------------
# Forward builder: pack once, return a jitted forward
# ---------------------------------------------------------------------------
def make_mapping_network(params, *, fuse_domains=None, tb_cap=1024):
    latent_dim = params["shared"][0][0].shape[0]
    num_domains = len(params["unshared"])
    style_dim = params["unshared"][0][-1][0].shape[-1]
    dout = num_domains * style_dim
    dout_pad = _round_up(dout, 128)

    kind = ""
    try:
        kind = jax.devices()[0].device_kind.lower()
    except Exception:  # pragma: no cover - defensive
        pass
    if fuse_domains is None:
        # v5e's MXUs are natively 128-wide -> keep per-domain matmuls there;
        # v6e/v7x have 256-wide MXUs -> block-diagonal cross-domain fusion wins.
        fuse_domains = "v5" not in kind
    two_cores = "v7" in kind  # v7x: 2 TensorCores share the parallel grid axis

    if fuse_domains:
        packed = pack_params_fused(params, dout_pad)
        kernel = _mapping_kernel_fused
    else:
        packed = pack_params_per_domain(params)
        kernel = _mapping_kernel_per_domain

    def _resident_spec(arr):
        # Weights: one full block, constant index map (resident across the grid).
        # If num_domains ever scales up, pipeline_mode=pl.Buffered(1) here would
        # halve weight VMEM (constant index map -> double-buffering is waste).
        return pl.BlockSpec(arr.shape, lambda i, _n=arr.ndim: (0,) * _n)

    @jax.jit
    def _forward(z, *weights):
        B = z.shape[0]
        B8 = _round_up(B, 8)
        TB = min(B8, tb_cap)
        if two_cores and B8 > 8:
            # Keep >= 2 grid steps on the "parallel" axis so both TCs are fed.
            TB = min(TB, _round_up(pl.cdiv(B8, 2), 16))
        if TB < B8:
            TB = _round_up(TB, 16)   # keep bf16 sublane tiles aligned when tiling
        B_pad = _round_up(B8, TB)

        zb = z.astype(jnp.bfloat16)
        if B_pad > B:
            zb = jnp.pad(zb, ((0, B_pad - B), (0, 0)))

        out = pl.pallas_call(
            kernel,
            out_shape=jax.ShapeDtypeStruct((B_pad, dout_pad), jnp.float32),
            grid=(B_pad // TB,),
            in_specs=[pl.BlockSpec((TB, latent_dim), lambda i: (i, 0))]
                     + [_resident_spec(w) for w in weights],
            out_specs=pl.BlockSpec((TB, dout_pad), lambda i: (i, 0)),
            compiler_params=pltpu.CompilerParams(
                dimension_semantics=("parallel",)),
        )(zb, *weights)

        return out[:B, :dout].reshape(B, num_domains, style_dim)

    return lambda z: _forward(z, *packed)


# ---------------------------------------------------------------------------
# Pure-JAX f32 reference (PyTorch-equivalent semantics)
# ---------------------------------------------------------------------------
def _mish_ref(x):
    return x * jnp.tanh(jnp.logaddexp(x, 0.0))


def reference_forward(z, params):
    def linear(h, w, b):
        return jnp.dot(h, w, precision=jax.lax.Precision.HIGHEST) + b

    h = z
    for w, b in params["shared"]:
        h = _mish_ref(linear(h, w, b))
    outs = []
    for layers in params["unshared"]:
        hd = h
        for w, b in layers[:-1]:
            hd = _mish_ref(linear(hd, w, b))
        w, b = layers[-1]
        outs.append(linear(hd, w, b))
    return jnp.stack(outs, axis=1)  # (B, num_domains, style_dim)


# ---------------------------------------------------------------------------
# Deterministic parameter init (shapes follow MappingNetwork.__init__)
# ---------------------------------------------------------------------------
def init_params(key, latent_dim=16, style_dim=64, num_domains=2):
    def linear_init(k, fan_in, fan_out):
        kw, kb = jax.random.split(k)
        bound = 1.0 / math.sqrt(fan_in)
        w = jax.random.uniform(kw, (fan_in, fan_out), jnp.float32, -bound, bound)
        b = jax.random.uniform(kb, (fan_out,), jnp.float32, -bound, bound)
        return w, b

    shared = []
    for d in [latent_dim] + [HIDDEN] * 3:
        key, k = jax.random.split(key)
        shared.append(linear_init(k, d, HIDDEN))

    unshared = []
    for _ in range(num_domains):
        layers = []
        for _ in range(3):
            key, k = jax.random.split(key)
            layers.append(linear_init(k, HIDDEN, HIDDEN))
        key, k = jax.random.split(key)
        layers.append(linear_init(k, HIDDEN, style_dim))
        unshared.append(layers)

    return {"shared": shared, "unshared": unshared}


if __name__ == "__main__":
    key = jax.random.PRNGKey(0)
    key, kz = jax.random.split(key)
    B, latent_dim, style_dim, num_domains = 2, 16, 64, 2
    z = jax.random.normal(kz, (B, latent_dim), jnp.float32)
    params = init_params(key, latent_dim, style_dim, num_domains)

    ref = jax.block_until_ready(reference_forward(z, params))

    # Default path: packing done once here, forward is jitted.
    forward = make_mapping_network(params)
    out = jax.block_until_ready(forward(z))
    assert out.shape == (B, num_domains, style_dim), out.shape
    assert bool(jnp.all(jnp.isfinite(out)))
    err = float(jnp.max(jnp.abs(out - ref)))
    assert err < 5e-2, f"default path mismatch vs f32 reference: {err}"

    # Exercise both kernel variants (fused block-diagonal and per-domain).
    for fuse in (True, False):
        o = jax.block_until_ready(make_mapping_network(params, fuse_domains=fuse)(z))
        e = float(jnp.max(jnp.abs(o - ref)))
        assert e < 5e-2, f"fuse_domains={fuse} mismatch vs f32 reference: {e}"

    print("KERNEL_OK")
</pallas_src>

<mosaic_0001>
module attributes {stable_mosaic.version = 11 : i64} {
  func.func @_mapping_kernel_fused(%arg0: i32, %arg1: memref<8x16xbf16, #tpu.memory_space<vmem>>, %arg2: memref<16x128xbf16, #tpu.memory_space<vmem>>, %arg3: memref<1x128xf32, #tpu.memory_space<vmem>>, %arg4: memref<3x128x128xbf16, #tpu.memory_space<vmem>>, %arg5: memref<3x1x128xf32, #tpu.memory_space<vmem>>, %arg6: memref<128x256xbf16, #tpu.memory_space<vmem>>, %arg7: memref<1x256xf32, #tpu.memory_space<vmem>>, %arg8: memref<2x256x256xbf16, #tpu.memory_space<vmem>>, %arg9: memref<2x1x256xf32, #tpu.memory_space<vmem>>, %arg10: memref<256x128xbf16, #tpu.memory_space<vmem>>, %arg11: memref<1x128xf32, #tpu.memory_space<vmem>>, %arg12: memref<8x128xf32, #tpu.memory_space<vmem>>) attributes {dimension_semantics = [#tpu.dimension_semantics<parallel>], iteration_bounds = array<i64: 1>, scalar_prefetch = 0 : i64, scratch_operands = 0 : i64, tpu.core_type = #tpu.core_type<tc>, window_params = [{transform_indices = @transform_0, window_bounds = array<i64: 8, 16>}, {pipeline_mode = #tpu.pipeline_mode<synchronous>, transform_indices = @transform_1, window_bounds = array<i64: 16, 128>}, {pipeline_mode = #tpu.pipeline_mode<synchronous>, transform_indices = @transform_2, window_bounds = array<i64: 1, 128>}, {pipeline_mode = #tpu.pipeline_mode<synchronous>, transform_indices = @transform_3, window_bounds = array<i64: 3, 128, 128>}, {pipeline_mode = #tpu.pipeline_mode<synchronous>, transform_indices = @transform_4, window_bounds = array<i64: 3, 1, 128>}, {pipeline_mode = #tpu.pipeline_mode<synchronous>, transform_indices = @transform_5, window_bounds = array<i64: 128, 256>}, {pipeline_mode = #tpu.pipeline_mode<synchronous>, transform_indices = @transform_6, window_bounds = array<i64: 1, 256>}, {pipeline_mode = #tpu.pipeline_mode<synchronous>, transform_indices = @transform_7, window_bounds = array<i64: 2, 256, 256>}, {pipeline_mode = #tpu.pipeline_mode<synchronous>, transform_indices = @transform_8, window_bounds = array<i64: 2, 1, 256>}, {pipeline_mode = #tpu.pipeline_mode<synchronous>, transform_indices = @transform_9, window_bounds = array<i64: 256, 128>}, {pipeline_mode = #tpu.pipeline_mode<synchronous>, transform_indices = @transform_10, window_bounds = array<i64: 1, 128>}, {transform_indices = @transform_11, window_bounds = array<i64: 8, 128>}]} {
    %c0 = arith.constant 0 : index
    %c0_0 = arith.constant 0 : index
    %0 = vector.load %arg1[%c0, %c0_0] : memref<8x16xbf16, #tpu.memory_space<vmem>>, vector<8x16xbf16>
    %c0_1 = arith.constant 0 : index
    %c0_2 = arith.constant 0 : index
    %1 = vector.load %arg2[%c0_1, %c0_2] : memref<16x128xbf16, #tpu.memory_space<vmem>>, vector<16x128xbf16>
    %cst = arith.constant dense<0.000000e+00> : vector<8x128xf32>
    %2 = tpu.matmul %0, %1, %cst {dimension_numbers = #tpu.dot_dimension_numbers<[1], [0], [0], [1], [0, 0, 1, 1], [], []>} : vector<8x16xbf16>, vector<16x128xbf16>, vector<8x128xf32> -> vector<8x128xf32>
    %c0_3 = arith.constant 0 : index
    %c0_4 = arith.constant 0 : index
    %3 = vector.load %arg3[%c0_3, %c0_4] : memref<1x128xf32, #tpu.memory_space<vmem>>, vector<1x128xf32>
    %4 = vector.broadcast %3 : vector<1x128xf32> to vector<8x128xf32>
    %5 = arith.addf %2, %4 : vector<8x128xf32>
    %6 = math.absf %5 : vector<8x128xf32>
    %cst_5 = arith.constant 0.000000e+00 : f32
    %7 = vector.broadcast %cst_5 : f32 to vector<8x128xf32>
    %8 = arith.subf %7, %6 : vector<8x128xf32>
    %9 = math.exp %8 : vector<8x128xf32>
    %cst_6 = arith.constant 0.000000e+00 : f32
    %10 = vector.broadcast %cst_6 : f32 to vector<8x128xf32>
    %11 = arith.cmpf oge, %5, %10 : vector<8x128xf32>
    %cst_7 = arith.constant 2.000000e+00 : f32
    %12 = vector.broadcast %cst_7 : f32 to vector<8x128xf32>
    %13 = arith.mulf %12, %9 : vector<8x128xf32>
    %cst_8 = arith.constant 1.000000e+00 : f32
    %14 = vector.broadcast %cst_8 : f32 to vector<8x128xf32>
    %15 = arith.addf %14, %13 : vector<8x128xf32>
    %cst_9 = arith.constant 2.000000e+00 : f32
    %16 = vector.broadcast %cst_9 : f32 to vector<8x128xf32>
    %17 = arith.addf %9, %16 : vector<8x128xf32>
    %18 = arith.mulf %9, %17 : vector<8x128xf32>
    %19 = arith.select %11, %15, %18 : vector<8x128xi1>, vector<8x128xf32>
    %20 = arith.mulf %9, %9 : vector<8x128xf32>
    %cst_10 = arith.constant 1.000000e+00 : f32
    %21 = vector.broadcast %cst_10 : f32 to vector<8x128xf32>
    %22 = arith.select %11, %20, %21 : vector<8x128xi1>, vector<8x128xf32>
    %cst_11 = arith.constant 2.000000e+00 : f32
    %23 = vector.broadcast %cst_11 : f32 to vector<8x128xf32>
    %24 = arith.mulf %23, %22 : vector<8x128xf32>
    %25 = arith.addf %19, %24 : vector<8x128xf32>
    %26 = arith.mulf %5, %19 : vector<8x128xf32>
    %27 = tpu.reciprocal %25 {approx = true} : vector<8x128xf32> -> vector<8x128xf32>
    %28 = arith.mulf %26, %27 : vector<8x128xf32>
    %29 = arith.truncf %28 : vector<8x128xf32> to vector<8x128xbf16>
    %c0_12 = arith.constant 0 : index
    %c0_13 = arith.constant 0 : index
    %c0_14 = arith.constant 0 : index
    %30 = vector.load %arg4[%c0_12, %c0_13, %c0_14] : memref<3x128x128xbf16, #tpu.memory_space<vmem>>, vector<1x128x128xbf16>
    %31 = vector.shape_cast %30 : vector<1x128x128xbf16> to vector<128x128xbf16>
    %cst_15 = arith.constant dense<0.000000e+00> : vector<8x128xf32>
    %32 = tpu.matmul %29, %31, %cst_15 {dimension_numbers = #tpu.dot_dimension_numbers<[1], [0], [0], [1], [0, 0, 1, 1], [], []>} : vector<8x128xbf16>, vector<128x128xbf16>, vector<8x128xf32> -> vector<8x128xf32>
    %c0_16 = arith.constant 0 : index
    %c0_17 = arith.constant 0 : index
    %c0_18 = arith.constant 0 : index
    %33 = vector.load %arg5[%c0_16, %c0_17, %c0_18] : memref<3x1x128xf32, #tpu.memory_space<vmem>>, vector<1x1x128xf32>
    %34 = vector.shape_cast %33 : vector<1x1x128xf32> to vector<1x128xf32>
    %35 = vector.broadcast %34 : vector<1x128xf32> to vector<8x128xf32>
    %36 = arith.addf %32, %35 : vector<8x128xf32>
    %37 = math.absf %36 : vector<8x128xf32>
    %cst_19 = arith.constant 0.000000e+00 : f32
    %38 = vector.broadcast %cst_19 : f32 to vector<8x128xf32>
    %39 = arith.subf %38, %37 : vector<8x128xf32>
    %40 = math.exp %39 : vector<8x128xf32>
    %cst_20 = arith.constant 0.000000e+00 : f32
    %41 = vector.broadcast %cst_20 : f32 to vector<8x128xf32>
    %42 = arith.cmpf oge, %36, %41 : vector<8x128xf32>
    %cst_21 = arith.constant 2.000000e+00 : f32
    %43 = vector.broadcast %cst_21 : f32 to vector<8x128xf32>
    %44 = arith.mulf %43, %40 : vector<8x128xf32>
    %cst_22 = arith.constant 1.000000e+00 : f32
    %45 = vector.broadcast %cst_22 : f32 to vector<8x128xf32>
    %46 = arith.addf %45, %44 : vector<8x128xf32>
    %cst_23 = arith.constant 2.000000e+00 : f32
    %47 = vector.broadcast %cst_23 : f32 to vector<8x128xf32>
    %48 = arith.addf %40, %47 : vector<8x128xf32>
    %49 = arith.mulf %40, %48 : vector<8x128xf32>
    %50 = arith.select %42, %46, %49 : vector<8x128xi1>, vector<8x128xf32>
    %51 = arith.mulf %40, %40 : vector<8x128xf32>
    %cst_24 = arith.constant 1.000000e+00 : f32
    %52 = vector.broadcast %cst_24 : f32 to vector<8x128xf32>
    %53 = arith.select %42, %51, %52 : vector<8x128xi1>, vector<8x128xf32>
    %cst_25 = arith.constant 2.000000e+00 : f32
    %54 = vector.broadcast %cst_25 : f32 to vector<8x128xf32>
    %55 = arith.mulf %54, %53 : vector<8x128xf32>
    %56 = arith.addf %50, %55 : vector<8x128xf32>
    %57 = arith.mulf %36, %50 : vector<8x128xf32>
    %58 = tpu.reciprocal %56 {approx = true} : vector<8x128xf32> -> vector<8x128xf32>
    %59 = arith.mulf %57, %58 : vector<8x128xf32>
    %60 = arith.truncf %59 : vector<8x128xf32> to vector<8x128xbf16>
    %c1 = arith.constant 1 : index
    %c0_26 = arith.constant 0 : index
    %c0_27 = arith.constant 0 : index
    %61 = vector.load %arg4[%c1, %c0_26, %c0_27] : memref<3x128x128xbf16, #tpu.memory_space<vmem>>, vector<1x128x128xbf16>
    %62 = vector.shape_cast %61 : vector<1x128x128xbf16> to vector<128x128xbf16>
    %cst_28 = arith.constant dense<0.000000e+00> : vector<8x128xf32>
    %63 = tpu.matmul %60, %62, %cst_28 {dimension_numbers = #tpu.dot_dimension_numbers<[1], [0], [0], [1], [0, 0, 1, 1], [], []>} : vector<8x128xbf16>, vector<128x128xbf16>, vector<8x128xf32> -> vector<8x128xf32>
    %c1_29 = arith.constant 1 : index
    %c0_30 = arith.constant 0 : index
    %c0_31 = arith.constant 0 : index
    %64 = vector.load %arg5[%c1_29, %c0_30, %c0_31] : memref<3x1x128xf32, #tpu.memory_space<vmem>>, vector<1x1x128xf32>
    %65 = vector.shape_cast %64 : vector<1x1x128xf32> to vector<1x128xf32>
    %66 = vector.broadcast %65 : vector<1x128xf32> to vector<8x128xf32>
    %67 = arith.addf %63, %66 : vector<8x128xf32>
    %68 = math.absf %67 : vector<8x128xf32>
    %cst_32 = arith.constant 0.000000e+00 : f32
    %69 = vector.broadcast %cst_32 : f32 to vector<8x128xf32>
    %70 = arith.subf %69, %68 : vector<8x128xf32>
    %71 = math.exp %70 : vector<8x128xf32>
    %cst_33 = arith.constant 0.000000e+00 : f32
    %72 = vector.broadcast %cst_33 : f32 to vector<8x128xf32>
    %73 = arith.cmpf oge, %67, %72 : vector<8x128xf32>
    %cst_34 = arith.constant 2.000000e+00 : f32
    %74 = vector.broadcast %cst_34 : f32 to vector<8x128xf32>
    %75 = arith.mulf %74, %71 : vector<8x128xf32>
    %cst_35 = arith.constant 1.000000e+00 : f32
    %76 = vector.broadcast %cst_35 : f32 to vector<8x128xf32>
    %77 = arith.addf %76, %75 : vector<8x128xf32>
    %cst_36 = arith.constant 2.000000e+00 : f32
    %78 = vector.broadcast %cst_36 : f32 to vector<8x128xf32>
    %79 = arith.addf %71, %78 : vector<8x128xf32>
    %80 = arith.mulf %71, %79 : vector<8x128xf32>
    %81 = arith.select %73, %77, %80 : vector<8x128xi1>, vector<8x128xf32>
    %82 = arith.mulf %71, %71 : vector<8x128xf32>
    %cst_37 = arith.constant 1.000000e+00 : f32
    %83 = vector.broadcast %cst_37 : f32 to vector<8x128xf32>
    %84 = arith.select %73, %82, %83 : vector<8x128xi1>, vector<8x128xf32>
    %cst_38 = arith.constant 2.000000e+00 : f32
    %85 = vector.broadcast %cst_38 : f32 to vector<8x128xf32>
    %86 = arith.mulf %85, %84 : vector<8x128xf32>
    %87 = arith.addf %81, %86 : vector<8x128xf32>
    %88 = arith.mulf %67, %81 : vector<8x128xf32>
    %89 = tpu.reciprocal %87 {approx = true} : vector<8x128xf32> -> vector<8x128xf32>
    %90 = arith.mulf %88, %89 : vector<8x128xf32>
    %91 = arith.truncf %90 : vector<8x128xf32> to vector<8x128xbf16>
    %c2 = arith.constant 2 : index
    %c0_39 = arith.constant 0 : index
    %c0_40 = arith.constant 0 : index
    %92 = vector.load %arg4[%c2, %c0_39, %c0_40] : memref<3x128x128xbf16, #tpu.memory_space<vmem>>, vector<1x128x128xbf16>
    %93 = vector.shape_cast %92 : vector<1x128x128xbf16> to vector<128x128xbf16>
    %cst_41 = arith.constant dense<0.000000e+00> : vector<8x128xf32>
    %94 = tpu.matmul %91, %93, %cst_41 {dimension_numbers = #tpu.dot_dimension_numbers<[1], [0], [0], [1], [0, 0, 1, 1], [], []>} : vector<8x128xbf16>, vector<128x128xbf16>, vector<8x128xf32> -> vector<8x128xf32>
    %c2_42 = arith.constant 2 : index
    %c0_43 = arith.constant 0 : index
    %c0_44 = arith.constant 0 : index
    %95 = vector.load %arg5[%c2_42, %c0_43, %c0_44] : memref<3x1x128xf32, #tpu.memory_space<vmem>>, vector<1x1x128xf32>
    %96 = vector.shape_cast %95 : vector<1x1x128xf32> to vector<1x128xf32>
    %97 = vector.broadcast %96 : vector<1x128xf32> to vector<8x128xf32>
    %98 = arith.addf %94, %97 : vector<8x128xf32>
    %99 = math.absf %98 : vector<8x128xf32>
    %cst_45 = arith.constant 0.000000e+00 : f32
    %100 = vector.broadcast %cst_45 : f32 to vector<8x128xf32>
    %101 = arith.subf %100, %99 : vector<8x128xf32>
    %102 = math.exp %101 : vector<8x128xf32>
    %cst_46 = arith.constant 0.000000e+00 : f32
    %103 = vector.broadcast %cst_46 : f32 to vector<8x128xf32>
    %104 = arith.cmpf oge, %98, %103 : vector<8x128xf32>
    %cst_47 = arith.constant 2.000000e+00 : f32
    %105 = vector.broadcast %cst_47 : f32 to vector<8x128xf32>
    %106 = arith.mulf %105, %102 : vector<8x128xf32>
    %cst_48 = arith.constant 1.000000e+00 : f32
    %107 = vector.broadcast %cst_48 : f32 to vector<8x128xf32>
    %108 = arith.addf %107, %106 : vector<8x128xf32>
    %cst_49 = arith.constant 2.000000e+00 : f32
    %109 = vector.broadcast %cst_49 : f32 to vector<8x128xf32>
    %110 = arith.addf %102, %109 : vector<8x128xf32>
    %111 = arith.mulf %102, %110 : vector<8x128xf32>
    %112 = arith.select %104, %108, %111 : vector<8x128xi1>, vector<8x128xf32>
    %113 = arith.mulf %102, %102 : vector<8x128xf32>
    %cst_50 = arith.constant 1.000000e+00 : f32
    %114 = vector.broadcast %cst_50 : f32 to vector<8x128xf32>
    %115 = arith.select %104, %113, %114 : vector<8x128xi1>, vector<8x128xf32>
    %cst_51 = arith.constant 2.000000e+00 : f32
    %116 = vector.broadcast %cst_51 : f32 to vector<8x128xf32>
    %117 = arith.mulf %116, %115 : vector<8x128xf32>
    %118 = arith.addf %112, %117 : vector<8x128xf32>
    %119 = arith.mulf %98, %112 : vector<8x128xf32>
    %120 = tpu.reciprocal %118 {approx = true} : vector<8x128xf32> -> vector<8x128xf32>
    %121 = arith.mulf %119, %120 : vector<8x128xf32>
    %122 = arith.truncf %121 : vector<8x128xf32> to vector<8x128xbf16>
    %c0_52 = arith.constant 0 : index
    %c0_53 = arith.constant 0 : index
    %123 = vector.load %arg6[%c0_52, %c0_53] : memref<128x256xbf16, #tpu.memory_space<vmem>>, vector<128x256xbf16>
    %cst_54 = arith.constant dense<0.000000e+00> : vector<8x256xf32>
    %124 = tpu.matmul %122, %123, %cst_54 {dimension_numbers = #tpu.dot_dimension_numbers<[1], [0], [0], [1], [0, 0, 1, 1], [], []>} : vector<8x128xbf16>, vector<128x256xbf16>, vector<8x256xf32> -> vector<8x256xf32>
    %c0_55 = arith.constant 0 : index
    %c0_56 = arith.constant 0 : index
    %125 = vector.load %arg7[%c0_55, %c0_56] : memref<1x256xf32, #tpu.memory_space<vmem>>, vector<1x256xf32>
    %126 = vector.broadcast %125 : vector<1x256xf32> to vector<8x256xf32>
    %127 = arith.addf %124, %126 : vector<8x256xf32>
    %128 = math.absf %127 : vector<8x256xf32>
    %cst_57 = arith.constant 0.000000e+00 : f32
    %129 = vector.broadcast %cst_57 : f32 to vector<8x256xf32>
    %130 = arith.subf %129, %128 : vector<8x256xf32>
    %131 = math.exp %130 : vector<8x256xf32>
    %cst_58 = arith.constant 0.000000e+00 : f32
    %132 = vector.broadcast %cst_58 : f32 to vector<8x256xf32>
    %133 = arith.cmpf oge, %127, %132 : vector<8x256xf32>
    %cst_59 = arith.constant 2.000000e+00 : f32
    %134 = vector.broadcast %cst_59 : f32 to vector<8x256xf32>
    %135 = arith.mulf %134, %131 : vector<8x256xf32>
    %cst_60 = arith.constant 1.000000e+00 : f32
    %136 = vector.broadcast %cst_60 : f32 to vector<8x256xf32>
    %137 = arith.addf %136, %135 : vector<8x256xf32>
    %cst_61 = arith.constant 2.000000e+00 : f32
    %138 = vector.broadcast %cst_61 : f32 to vector<8x256xf32>
    %139 = arith.addf %131, %138 : vector<8x256xf32>
    %140 = arith.mulf %131, %139 : vector<8x256xf32>
    %141 = arith.select %133, %137, %140 : vector<8x256xi1>, vector<8x256xf32>
    %142 = arith.mulf %131, %131 : vector<8x256xf32>
    %cst_62 = arith.constant 1.000000e+00 : f32
    %143 = vector.broadcast %cst_62 : f32 to vector<8x256xf32>
    %144 = arith.select %133, %142, %143 : vector<8x256xi1>, vector<8x256xf32>
    %cst_63 = arith.constant 2.000000e+00 : f32
    %145 = vector.broadcast %cst_63 : f32 to vector<8x256xf32>
    %146 = arith.mulf %145, %144 : vector<8x256xf32>
    %147 = arith.addf %141, %146 : vector<8x256xf32>
    %148 = arith.mulf %127, %141 : vector<8x256xf32>
    %149 = tpu.reciprocal %147 {approx = true} : vector<8x256xf32> -> vector<8x256xf32>
    %150 = arith.mulf %148, %149 : vector<8x256xf32>
    %151 = arith.truncf %150 : vector<8x256xf32> to vector<8x256xbf16>
    %c0_64 = arith.constant 0 : index
    %c0_65 = arith.constant 0 : index
    %c0_66 = arith.constant 0 : index
    %152 = vector.load %arg8[%c0_64, %c0_65, %c0_66] : memref<2x256x256xbf16, #tpu.memory_space<vmem>>, vector<1x256x256xbf16>
    %153 = vector.shape_cast %152 : vector<1x256x256xbf16> to vector<256x256xbf16>
    %cst_67 = arith.constant dense<0.000000e+00> : vector<8x256xf32>
    %154 = tpu.matmul %151, %153, %cst_67 {dimension_numbers = #tpu.dot_dimension_numbers<[1], [0], [0], [1], [0, 0, 1, 1], [], []>} : vector<8x256xbf16>, vector<256x256xbf16>, vector<8x256xf32> -> vector<8x256xf32>
    %c0_68 = arith.constant 0 : index
    %c0_69 = arith.constant 0 : index
    %c0_70 = arith.constant 0 : index
    %155 = vector.load %arg9[%c0_68, %c0_69, %c0_70] : memref<2x1x256xf32, #tpu.memory_space<vmem>>, vector<1x1x256xf32>
    %156 = vector.shape_cast %155 : vector<1x1x256xf32> to vector<1x256xf32>
    %157 = vector.broadcast %156 : vector<1x256xf32> to vector<8x256xf32>
    %158 = arith.addf %154, %157 : vector<8x256xf32>
    %159 = math.absf %158 : vector<8x256xf32>
    %cst_71 = arith.constant 0.000000e+00 : f32
    %160 = vector.broadcast %cst_71 : f32 to vector<8x256xf32>
    %161 = arith.subf %160, %159 : vector<8x256xf32>
    %162 = math.exp %161 : vector<8x256xf32>
    %cst_72 = arith.constant 0.000000e+00 : f32
    %163 = vector.broadcast %cst_72 : f32 to vector<8x256xf32>
    %164 = arith.cmpf oge, %158, %163 : vector<8x256xf32>
    %cst_73 = arith.constant 2.000000e+00 : f32
    %165 = vector.broadcast %cst_73 : f32 to vector<8x256xf32>
    %166 = arith.mulf %165, %162 : vector<8x256xf32>
    %cst_74 = arith.constant 1.000000e+00 : f32
    %167 = vector.broadcast %cst_74 : f32 to vector<8x256xf32>
    %168 = arith.addf %167, %166 : vector<8x256xf32>
    %cst_75 = arith.constant 2.000000e+00 : f32
    %169 = vector.broadcast %cst_75 : f32 to vector<8x256xf32>
    %170 = arith.addf %162, %169 : vector<8x256xf32>
    %171 = arith.mulf %162, %170 : vector<8x256xf32>
    %172 = arith.select %164, %168, %171 : vector<8x256xi1>, vector<8x256xf32>
    %173 = arith.mulf %162, %162 : vector<8x256xf32>
    %cst_76 = arith.constant 1.000000e+00 : f32
    %174 = vector.broadcast %cst_76 : f32 to vector<8x256xf32>
    %175 = arith.select %164, %173, %174 : vector<8x256xi1>, vector<8x256xf32>
    %cst_77 = arith.constant 2.000000e+00 : f32
    %176 = vector.broadcast %cst_77 : f32 to vector<8x256xf32>
    %177 = arith.mulf %176, %175 : vector<8x256xf32>
    %178 = arith.addf %172, %177 : vector<8x256xf32>
    %179 = arith.mulf %158, %172 : vector<8x256xf32>
    %180 = tpu.reciprocal %178 {approx = true} : vector<8x256xf32> -> vector<8x256xf32>
    %181 = arith.mulf %179, %180 : vector<8x256xf32>
    %182 = arith.truncf %181 : vector<8x256xf32> to vector<8x256xbf16>
    %c1_78 = arith.constant 1 : index
    %c0_79 = arith.constant 0 : index
    %c0_80 = arith.constant 0 : index
    %183 = vector.load %arg8[%c1_78, %c0_79, %c0_80] : memref<2x256x256xbf16, #tpu.memory_space<vmem>>, vector<1x256x256xbf16>
    %184 = vector.shape_cast %183 : vector<1x256x256xbf16> to vector<256x256xbf16>
    %cst_81 = arith.constant dense<0.000000e+00> : vector<8x256xf32>
    %185 = tpu.matmul %182, %184, %cst_81 {dimension_numbers = #tpu.dot_dimension_numbers<[1], [0], [0], [1], [0, 0, 1, 1], [], []>} : vector<8x256xbf16>, vector<256x256xbf16>, vector<8x256xf32> -> vector<8x256xf32>
    %c1_82 = arith.constant 1 : index
    %c0_83 = arith.constant 0 : index
    %c0_84 = arith.constant 0 : index
    %186 = vector.load %arg9[%c1_82, %c0_83, %c0_84] : memref<2x1x256xf32, #tpu.memory_space<vmem>>, vector<1x1x256xf32>
    %187 = vector.shape_cast %186 : vector<1x1x256xf32> to vector<1x256xf32>
    %188 = vector.broadcast %187 : vector<1x256xf32> to vector<8x256xf32>
    %189 = arith.addf %185, %188 : vector<8x256xf32>
    %190 = math.absf %189 : vector<8x256xf32>
    %cst_85 = arith.constant 0.000000e+00 : f32
    %191 = vector.broadcast %cst_85 : f32 to vector<8x256xf32>
    %192 = arith.subf %191, %190 : vector<8x256xf32>
    %193 = math.exp %192 : vector<8x256xf32>
    %cst_86 = arith.constant 0.000000e+00 : f32
    %194 = vector.broadcast %cst_86 : f32 to vector<8x256xf32>
    %195 = arith.cmpf oge, %189, %194 : vector<8x256xf32>
    %cst_87 = arith.constant 2.000000e+00 : f32
    %196 = vector.broadcast %cst_87 : f32 to vector<8x256xf32>
    %197 = arith.mulf %196, %193 : vector<8x256xf32>
    %cst_88 = arith.constant 1.000000e+00 : f32
    %198 = vector.broadcast %cst_88 : f32 to vector<8x256xf32>
    %199 = arith.addf %198, %197 : vector<8x256xf32>
    %cst_89 = arith.constant 2.000000e+00 : f32
    %200 = vector.broadcast %cst_89 : f32 to vector<8x256xf32>
    %201 = arith.addf %193, %200 : vector<8x256xf32>
    %202 = arith.mulf %193, %201 : vector<8x256xf32>
    %203 = arith.select %195, %199, %202 : vector<8x256xi1>, vector<8x256xf32>
    %204 = arith.mulf %193, %193 : vector<8x256xf32>
    %cst_90 = arith.constant 1.000000e+00 : f32
    %205 = vector.broadcast %cst_90 : f32 to vector<8x256xf32>
    %206 = arith.select %195, %204, %205 : vector<8x256xi1>, vector<8x256xf32>
    %cst_91 = arith.constant 2.000000e+00 : f32
    %207 = vector.broadcast %cst_91 : f32 to vector<8x256xf32>
    %208 = arith.mulf %207, %206 : vector<8x256xf32>
    %209 = arith.addf %203, %208 : vector<8x256xf32>
    %210 = arith.mulf %189, %203 : vector<8x256xf32>
    %211 = tpu.reciprocal %209 {approx = true} : vector<8x256xf32> -> vector<8x256xf32>
    %212 = arith.mulf %210, %211 : vector<8x256xf32>
    %213 = arith.truncf %212 : vector<8x256xf32> to vector<8x256xbf16>
    %c0_92 = arith.constant 0 : index
    %c0_93 = arith.constant 0 : index
    %214 = vector.load %arg10[%c0_92, %c0_93] : memref<256x128xbf16, #tpu.memory_space<vmem>>, vector<256x128xbf16>
    %cst_94 = arith.constant dense<0.000000e+00> : vector<8x128xf32>
    %215 = tpu.matmul %213, %214, %cst_94 {dimension_numbers = #tpu.dot_dimension_numbers<[1], [0], [0], [1], [0, 0, 1, 1], [], []>} : vector<8x256xbf16>, vector<256x128xbf16>, vector<8x128xf32> -> vector<8x128xf32>
    %c0_95 = arith.constant 0 : index
    %c0_96 = arith.constant 0 : index
    %216 = vector.load %arg11[%c0_95, %c0_96] : memref<1x128xf32, #tpu.memory_space<vmem>>, vector<1x128xf32>
    %217 = vector.broadcast %216 : vector<1x128xf32> to vector<8x128xf32>
    %218 = arith.addf %215, %217 : vector<8x128xf32>
    %c0_97 = arith.constant 0 : index
    %c0_98 = arith.constant 0 : index
    %219 = vector.load %arg12[%c0_97, %c0_98] : memref<8x128xf32, #tpu.memory_space<vmem>>, vector<8x128xf32>
    tpu.vector_store %arg12[%c0_97, %c0_98], %218 {strides = array<i32>} : memref<8x128xf32, #tpu.memory_space<vmem>>, vector<8x128xf32>,
    return
  }
  func.func @transform_0(%arg0: i32) -> (i32, i32) {
    %c0_i32 = arith.constant 0 : i32
    %c0_i32_0 = arith.constant 0 : i32
    return %arg0, %c0_i32 : i32, i32
  }
  func.func @transform_1(%arg0: i32) -> (i32, i32) {
    %c0_i32 = arith.constant 0 : i32
    %c0_i32_0 = arith.constant 0 : i32
    %c0_i32_1 = arith.constant 0 : i32
    return %c0_i32, %c0_i32_0 : i32, i32
  }
  func.func @transform_2(%arg0: i32) -> (i32, i32) {
    %c0_i32 = arith.constant 0 : i32
    %c0_i32_0 = arith.constant 0 : i32
    %c0_i32_1 = arith.constant 0 : i32
    return %c0_i32, %c0_i32_0 : i32, i32
  }
  func.func @transform_3(%arg0: i32) -> (i32, i32, i32) {
    %c0_i32 = arith.constant 0 : i32
    %c0_i32_0 = arith.constant 0 : i32
    %c0_i32_1 = arith.constant 0 : i32
    %c0_i32_2 = arith.constant 0 : i32
    return %c0_i32, %c0_i32_0, %c0_i32_1 : i32, i32, i32
  }
  func.func @transform_4(%arg0: i32) -> (i32, i32, i32) {
    %c0_i32 = arith.constant 0 : i32
    %c0_i32_0 = arith.constant 0 : i32
    %c0_i32_1 = arith.constant 0 : i32
    %c0_i32_2 = arith.constant 0 : i32
    return %c0_i32, %c0_i32_0, %c0_i32_1 : i32, i32, i32
  }
  func.func @transform_5(%arg0: i32) -> (i32, i32) {
    %c0_i32 = arith.constant 0 : i32
    %c0_i32_0 = arith.constant 0 : i32
    %c0_i32_1 = arith.constant 0 : i32
    return %c0_i32, %c0_i32_0 : i32, i32
  }
  func.func @transform_6(%arg0: i32) -> (i32, i32) {
    %c0_i32 = arith.constant 0 : i32
    %c0_i32_0 = arith.constant 0 : i32
    %c0_i32_1 = arith.constant 0 : i32
    return %c0_i32, %c0_i32_0 : i32, i32
  }
  func.func @transform_7(%arg0: i32) -> (i32, i32, i32) {
    %c0_i32 = arith.constant 0 : i32
    %c0_i32_0 = arith.constant 0 : i32
    %c0_i32_1 = arith.constant 0 : i32
    %c0_i32_2 = arith.constant 0 : i32
    return %c0_i32, %c0_i32_0, %c0_i32_1 : i32, i32, i32
  }
  func.func @transform_8(%arg0: i32) -> (i32, i32, i32) {
    %c0_i32 = arith.constant 0 : i32
    %c0_i32_0 = arith.constant 0 : i32
    %c0_i32_1 = arith.constant 0 : i32
    %c0_i32_2 = arith.constant 0 : i32
    return %c0_i32, %c0_i32_0, %c0_i32_1 : i32, i32, i32
  }
  func.func @transform_9(%arg0: i32) -> (i32, i32) {
    %c0_i32 = arith.constant 0 : i32
    %c0_i32_0 = arith.constant 0 : i32
    %c0_i32_1 = arith.constant 0 : i32
    return %c0_i32, %c0_i32_0 : i32, i32
  }
  func.func @transform_10(%arg0: i32) -> (i32, i32) {
    %c0_i32 = arith.constant 0 : i32
    %c0_i32_0 = arith.constant 0 : i32
    %c0_i32_1 = arith.constant 0 : i32
    return %c0_i32, %c0_i32_0 : i32, i32
  }
  func.func @transform_11(%arg0: i32) -> (i32, i32) {
    %c0_i32 = arith.constant 0 : i32
    %c0_i32_0 = arith.constant 0 : i32
    return %arg0, %c0_i32 : i32, i32
  }
}

</mosaic_0001>

<bundles_post_ra>
// kernel: _forward.1
= control target key start
LH: loop header
LB: loop body
LE: loop exit
PB: predicated region body
PF: predicated region fallthrough
CT: control target
= control target key end

     0   :  { %16 = vsyncpa [#allocation3], 0  ;;  %s2299_s0 = inlined_call_operand.vmem [shape: bf16[8,16], index: 0, kind: input, shape index: {}]   ;;  %s2300_s1 = inlined_call_operand.vmem [shape: bf16[16,128], index: 1, kind: input, shape index: {}]   ;;  %s2301_s2 = inlined_call_operand.hbm [shape: f32[1,128], index: 2, kind: input, shape index: {}]   ;;  %s2302_s3 = inlined_call_operand.hbm [shape: bf16[3,128,128], index: 3, kind: input, shape index: {}]   ;;  %s2303_s4 = inlined_call_operand.vmem [shape: f32[3,1,128], index: 4, kind: input, shape index: {}]   ;;  %s2304_s5 = inlined_call_operand.hbm [shape: bf16[128,256], index: 5, kind: input, shape index: {}]   ;;  %s2305_s6 = inlined_call_operand.vmem [shape: f32[1,256], index: 6, kind: input, shape index: {}]   ;;  %s2306_s7 = inlined_call_operand.hbm [shape: bf16[2,256,256], index: 7, kind: input, shape index: {}]   ;;  %s2307_s8 = inlined_call_operand.vmem [shape: f32[2,1,256], index: 8, kind: input, shape index: {}]   ;;  %s2308_s9 = inlined_call_operand.hbm [shape: bf16[256,128], index: 9, kind: input, shape index: {}]   ;;  %s2309_s10 = inlined_call_operand.vmem [shape: f32[1,128], index: 10, kind: input, shape index: {}]   ;;  %s2310_s11 = inlined_call_operand.vmem [shape: f32[8,128], index: 11, kind: output, shape index: {}]  }
   0x1   :  { %17 = vsyncpa [#allocation5], 0 }
   0x2   :  { %18 = vsyncpa [#allocation8], 0  ;;  %s2082_s17 = smov [#allocation4]   ;;  %s1966_s21 = scalar_lea.hbm %s2302_s3, 3072 }
   0x3   :  { %s38_s18 = sshll.u32 %s2082_s17, 4  ;;  %p1967_p0 = scmp.ne.s32.totalorder %s2302_s3, %s1966_s21  ;;  %s39_s18 = int_to_ptr.vmem [resolvable:$true] %s38_s18 }
   0x4   :  { %p1970_p1 = scmp.lt.u32.totalorder %s1966_s21, %s2302_s3 }
   0x6   :  { %p1972_p2 = pnand %p1970_p1, %p1967_p0 }
   0x8   :  { %1975 = shalt.err (!%p1972_p2)
}
   0x9   :  { %s1976_s26 = scalar_lea.vmem %s39_s18, 3072  ;;  %p1981_p4 = scmp.lt.s32.totalorder %s39_s18, %s39_s18 }
   0xa   :  { %p1977_p3 = scmp.ne.s32.totalorder %s39_s18, %s1976_s26  ;;  %p1982_p5 = scmp.lt.s32.totalorder %s1976_s26, %s1976_s26 }
   0xc   :  { %p1983_p6 = por %p1982_p5, %p1981_p4 }
   0xe   :  { %p1984_p7 = pnand %p1983_p6, %p1977_p3 }
  0x10   :  { %1987 = shalt.err (!%p1984_p7)
}
  0x11   :  { %s2083_s27 = smov 64   ;;  %s2084_s28 = smov 4  }
  0x12   :  { %44 = dma.hbm_to_vmem [thread:$0]  %s2302_s3, 3072, %s39_s18, [#allocation5], %s2083_s27, %s2083_s27, %s2084_s28  }
  0x13   :  { %s2085_s12 = smov [#allocation7]   ;;  %s2086_s14 = smov [#allocation2]  }
  0x14   :  { %s66_s13 = sshll.u32 %s2085_s12, 4  ;;  %s29_s15 = sshll.u32 %s2086_s14, 4  ;;  %s67_s13 = int_to_ptr.vmem [resolvable:$true] %s66_s13  ;;  %s30_s15 = int_to_ptr.vmem [resolvable:$true] %s29_s15 }
  0x15   :  { %s1988_s19 = scalar_lea.hbm %s2306_s7, 8192 }
  0x16   :  { %p1989_p8 = scmp.ne.s32.totalorder %s2306_s7, %s1988_s19  ;;  %p1992_p9 = scmp.lt.u32.totalorder %s1988_s19, %s2306_s7 }
  0x18   :  { %p1994_p10 = pnand %p1992_p9, %p1989_p8 }
  0x1a   :  { %1997 = shalt.err (!%p1994_p10)
}
  0x1b   :  { %s1998_s3 = scalar_lea.vmem %s67_s13, 8192  ;;  %p2003_p12 = scmp.lt.s32.totalorder %s67_s13, %s67_s13 }
  0x1c   :  { %p1999_p11 = scmp.ne.s32.totalorder %s67_s13, %s1998_s3  ;;  %p2004_p13 = scmp.lt.s32.totalorder %s1998_s3, %s1998_s3 }
  0x1e   :  { %p2005_p0 = por %p2004_p13, %p2003_p12 }
  0x20   :  { %p2006_p1 = pnand %p2005_p0, %p1999_p11 }
  0x22   :  { %2009 = shalt.err (!%p2006_p1)
}
  0x23   :  { %s2087_s18 = smov 128   ;;  %s2088_s24 = smov 8  }
  0x24   :  { %72 = dma.hbm_to_vmem [thread:$0]  %s2306_s7, 8192, %s67_s13, [#allocation8], %s2087_s18, %s2087_s18, %s2088_s24  }
  0x25   :  { %s2010_s12 = scalar_lea.hbm %s2301_s2, 16 }
  0x26   :  { %p2011_p2 = scmp.ne.s32.totalorder %s2301_s2, %s2010_s12  ;;  %p2014_p3 = scmp.lt.u32.totalorder %s2010_s12, %s2301_s2 }
  0x28   :  { %p2016_p4 = pnand %p2014_p3, %p2011_p2 }
  0x2a   :  { %2019 = shalt.err (!%p2016_p4)
}
  0x2b   :  { %s2020_s20 = scalar_lea.vmem %s30_s15, 16  ;;  %s2024_s21 = scalar_lea.vmem %s30_s15, 32 }
  0x2c   :  { %p2021_p5 = scmp.ne.s32.totalorder %s30_s15, %s2020_s20  ;;  %p2025_p6 = scmp.lt.s32.totalorder %s30_s15, %s30_s15 }
  0x2d   :  { %p2026_p7 = scmp.lt.s32.totalorder %s2024_s21, %s2020_s20 }
  0x2f   :  { %p2027_p8 = por %p2026_p7, %p2025_p6 }
  0x31   :  { %p2028_p9 = pnand %p2027_p8, %p2021_p5 }
  0x33   :  { %2031 = shalt.err (!%p2028_p9)
}
  0x34   :  { %32 = dma.hbm_to_vmem [thread:$0]  %s2301_s2, 16, %s30_s15, [#allocation3]  }
  0x35   :  { %s2089_s22 = smov [#allocation6]   ;;  %s2090_s3 = smov [#allocation9]  }
  0x36   :  { %s52_s23 = sshll.u32 %s2089_s22, 4  ;;  %s80_s25 = sshll.u32 %s2090_s3, 4  ;;  %s53_s23 = int_to_ptr.vmem [resolvable:$true] %s52_s23  ;;  %s81_s25 = int_to_ptr.vmem [resolvable:$true] %s80_s25 }
  0x37   :  { %s2032_s30 = scalar_lea.hbm %s2304_s5, 2048 }
  0x38   :  { %p2033_p10 = scmp.ne.s32.totalorder %s2304_s5, %s2032_s30  ;;  %p2036_p11 = scmp.lt.u32.totalorder %s2032_s30, %s2304_s5 }
  0x3a   :  { %p2038_p12 = pnand %p2036_p11, %p2033_p10 }
  0x3c   :  { %2041 = shalt.err (!%p2038_p12)
}
  0x3d   :  { %s2042_s2 = scalar_lea.vmem %s53_s23, 2048  ;;  %p2047_p0 = scmp.lt.s32.totalorder %s53_s23, %s53_s23 }
  0x3e   :  { %p2043_p13 = scmp.ne.s32.totalorder %s53_s23, %s2042_s2  ;;  %p2048_p1 = scmp.lt.s32.totalorder %s2042_s2, %s2042_s2 }
  0x40   :  { %p2049_p2 = por %p2048_p1, %p2047_p0 }
  0x42   :  { %p2050_p3 = pnand %p2049_p2, %p2043_p13 }
  0x44   :  { %2053 = shalt.err (!%p2050_p3)
}
  0x45   :  { %58 = dma.hbm_to_vmem [thread:$0]  %s2304_s5, 2048, %s53_s23, [#allocation5], %s2087_s18, %s2087_s18, %s2088_s24  }
  0x46   :  { %s2054_s7 = scalar_lea.hbm %s2308_s9, 2048 }
  0x47   :  { %p2055_p4 = scmp.ne.s32.totalorder %s2308_s9, %s2054_s7  ;;  %p2058_p5 = scmp.lt.u32.totalorder %s2054_s7, %s2308_s9 }
  0x49   :  { %p2060_p6 = pnand %p2058_p5, %p2055_p4 }
  0x4b   :  { %2063 = shalt.err (!%p2060_p6)
}
  0x4c   :  { %s2064_s29 = scalar_lea.vmem %s81_s25, 2048  ;;  %p2069_p8 = scmp.lt.s32.totalorder %s81_s25, %s81_s25 }
  0x4d   :  { %p2065_p7 = scmp.ne.s32.totalorder %s81_s25, %s2064_s29  ;;  %p2070_p9 = scmp.lt.s32.totalorder %s2064_s29, %s2064_s29 }
  0x4f   :  { %p2071_p10 = por %p2070_p9, %p2069_p8 }
  0x51   :  { %p2072_p11 = pnand %p2071_p10, %p2065_p7 }
  0x53   :  { %2075 = shalt.err (!%p2072_p11)
}
  0x54   :  { %86 = dma.hbm_to_vmem [thread:$0]  %s2308_s9, 2048, %s81_s25, [#allocation8], %s2083_s27, %s2083_s27, %s2084_s28  }
  0x55   :  { %2076 = dma.done.wait [#allocation3], 16  }
  0x56   :  { %2077 = vsyncadd [#allocation3], 4294967280 }
  0x57   :  { %2078 = dma.done.wait [#allocation5], 5120  }
  0x58   :  { %2079 = vsyncadd [#allocation5], 4294962176 }
  0x59   :  { %2080 = dma.done.wait [#allocation8], 10240  }
  0x5a   :  { %2081 = vsyncadd [#allocation8], 4294957056  ;;  %v2091_v0 = vmov 0.0   ;;  %vm2092_vm0 = vmmov 0   ;;  %v1765_v1 = vld [vmem:[%s2300_s1] sm:$0xff]   ;;  %vm121_vm1 = vcmask 130048  }
  0x5b   :  { %1687 = vmatprep.subr.bf16.mxu0 %v2091_v0  ;;  %1689 = vmatprep.mubr.msk.bf16.mxu0 %vm2092_vm0, %v2091_v0  ;;  %v105_v2 = vld [vmem:[%s2299_s0] sm:$0xf]  ;;  %v1768_v5 = vld [vmem:[#allocation4 + $0x10] sm:$0xff]   ;;  %v1769_v6 = vld [vmem:[#allocation4 + $0x18] sm:$0xff]  }
  0x5c   :  { %1693 = vmatprep.subr.bf16.mxu1 %v2091_v0  ;;  %1709 = vmatprep.mubr.msk.bf16.mxu1 %vm2092_vm0, %v2091_v0  ;;  %v1766_v3 = vld [vmem:[#allocation4] sm:$0xff]   ;;  %v1767_v4 = vld [vmem:[#allocation4 + $0x8] sm:$0xff]   ;;  %v1772_v9 = vld [vmem:[#allocation4 + $0x30] sm:$0xff]  }
  0x5d   :  { %1688 = vmatpush3.bf16.msra.mxu0 %v1765_v1  ;;  %1694 = vmatpush3.bf16.msra.mxu1 %v1766_v3  ;;  %v1770_v7 = vld [vmem:[#allocation4 + $0x20] sm:$0xff]   ;;  %v1771_v8 = vld [vmem:[#allocation4 + $0x28] sm:$0xff]   ;;  %v1773_v10 = vld [vmem:[#allocation4 + $0x38] sm:$0xff]  }
  0x5e   :  { %1713 = vmatprep.subr.bf16.mxu0 %v2091_v0  ;;  %1695 = vmatprep.subr.bf16.mxu1 %v2091_v0  ;;  %v1506_v11 = vld [vmem:[#allocation2] ss:$0 sm:$0xff]  ;;  %v1774_v34 = vld [vmem:[#allocation4 + $0x40] sm:$0xff]   ;;  %v1775_v35 = vld [vmem:[#allocation4 + $0x48] sm:$0xff]  }
  0x5f   :  { %v1776_v36 = vld [vmem:[#allocation4 + $0x50] sm:$0xff]   ;;  %v1777_v37 = vld [vmem:[#allocation4 + $0x58] sm:$0xff]   ;;  %v1778_v38 = vld [vmem:[#allocation4 + $0x60] sm:$0xff]  }
  0x60   :  { %1690 = vmatmul.mubr.msk.bf16.vlgmr.msra.gmra.mrb[0].mxu0 %vm121_vm1, %v105_v2  ;;  %v1779_v39 = vld [vmem:[#allocation4 + $0x68] sm:$0xff]   ;;  %v1780_v40 = vld [vmem:[#allocation4 + $0x70] sm:$0xff]   ;;  %v1781_v41 = vld [vmem:[#allocation4 + $0x78] sm:$0xff]  }
  0x61   :  { %1729 = vmatprep.mubr.msk.bf16.mxu0 %vm2092_vm0, %v2091_v0  ;;  %1696 = vmatpush3.bf16.msra.mxu1 %v1767_v4  ;;  %v1509_v42 = vld [vmem:[%s2303_s4] ss:$0 sm:$0xff]  ;;  %v1783_v3 = vld [vmem:[#allocation4 + $0x88] sm:$0xff]   ;;  %v1784_v4 = vld [vmem:[#allocation4 + $0x90] sm:$0xff]  }
  0x62   :  { %1697 = vmatprep.subr.bf16.mxu1 %v2091_v0  ;;  %1714 = vmatpush3.bf16.msra.mxu0 %v1774_v34  ;;  %v1782_v2 = vld [vmem:[#allocation4 + $0x80] sm:$0xff]   ;;  %v1795_v34 = vld [vmem:[#allocation6 + $0x14] ss:$8 sps:$4 sm:$0xff]  }
  0x63   :  { %1715 = vmatprep.subr.bf16.mxu0 %v2091_v0 }
  0x65   :  { %1698 = vmatpush3.bf16.msra.mxu1 %v1768_v5  ;;  %v1785_v5 = vld [vmem:[#allocation4 + $0x98] sm:$0xff]  }
  0x66   :  { %1699 = vmatprep.subr.bf16.mxu1 %v2091_v0  ;;  %1716 = vmatpush3.bf16.msra.mxu0 %v1775_v35  ;;  %v1793_v35 = vld [vmem:[#allocation6 + $0x10] ss:$8 sps:$4 sm:$0xff]  }
  0x67   :  { %1717 = vmatprep.subr.bf16.mxu0 %v2091_v0 }
  0x69   :  { %1700 = vmatpush3.bf16.msra.mxu1 %v1769_v6  ;;  %v1786_v6 = vld [vmem:[#allocation4 + $0xa0] sm:$0xff]  }
  0x6a   :  { %1701 = vmatprep.subr.bf16.mxu1 %v2091_v0  ;;  %1718 = vmatpush3.bf16.msra.mxu0 %v1776_v36  ;;  %v1798_v36 = vld [vmem:[#allocation6 + $0x24] ss:$8 sps:$4 sm:$0xff]  }
  0x6b   :  { %1719 = vmatprep.subr.bf16.mxu0 %v2091_v0 }
  0x6d   :  { %1702 = vmatpush3.bf16.msra.mxu1 %v1770_v7  ;;  %v1787_v7 = vld [vmem:[#allocation4 + $0xa8] sm:$0xff]  }
  0x6e   :  { %1703 = vmatprep.subr.bf16.mxu1 %v2091_v0  ;;  %1720 = vmatpush3.bf16.msra.mxu0 %v1777_v37  ;;  %v1796_v37 = vld [vmem:[#allocation6 + $0x20] ss:$8 sps:$4 sm:$0xff]  }
  0x6f   :  { %1721 = vmatprep.subr.bf16.mxu0 %v2091_v0 }
  0x71   :  { %1704 = vmatpush3.bf16.msra.mxu1 %v1771_v8  ;;  %v1788_v8 = vld [vmem:[#allocation4 + $0xb0] sm:$0xff]  }
  0x72   :  { %1705 = vmatprep.subr.bf16.mxu1 %v2091_v0  ;;  %1722 = vmatpush3.bf16.msra.mxu0 %v1778_v38  ;;  %v1801_v38 = vld [vmem:[#allocation6 + $0x34] ss:$8 sps:$4 sm:$0xff]  }
  0x73   :  { %1723 = vmatprep.subr.bf16.mxu0 %v2091_v0 }
  0x75   :  { %1706 = vmatpush3.bf16.msra.mxu1 %v1772_v9  ;;  %v1789_v9 = vld [vmem:[#allocation4 + $0xb8] sm:$0xff]  }
  0x76   :  { %1707 = vmatprep.subr.bf16.mxu1 %v2091_v0  ;;  %1724 = vmatpush3.bf16.msra.mxu0 %v1779_v39  ;;  %v1799_v39 = vld [vmem:[#allocation6 + $0x30] ss:$8 sps:$4 sm:$0xff]  }
  0x77   :  { %1725 = vmatprep.subr.bf16.mxu0 %v2091_v0 }
  0x79   :  { %1708 = vmatpush3.bf16.msra.mxu1 %v1773_v10  ;;  %v1519_v10 = vld [vmem:[%s2303_s4 + $0x1] ss:$0 sm:$0xff] }
  0x7a   :  { %1733 = vmatprep.subr.bf16.mxu1 %v2091_v0  ;;  %1726 = vmatpush3.bf16.msra.mxu0 %v1780_v40  ;;  %v1804_v40 = vld [vmem:[#allocation6 + $0x44] ss:$8 sps:$4 sm:$0xff]  }
  0x7b   :  { %1727 = vmatprep.subr.bf16.mxu0 %v2091_v0 }
  0x7e   :  { %1728 = vmatpush3.bf16.msra.mxu0 %v1781_v41  ;;  %v1802_v41 = vld [vmem:[#allocation6 + $0x40] ss:$8 sps:$4 sm:$0xff]  }
 0x133   :  { %v159_v12 = vpop.f32.mrb[0].mxu0 }
 0x134   :  { %v160_v13 = vadd.f32 %v1506_v11, %v159_v12  ;;  %v1691_v14 = vpop.f32.mrb[1].mxu0 }
 0x135   :  { %v162_v15 = vpop.f32.mrb[2].mxu0 }
 0x136   :  { %v165_v16 = vand.u32 2147483647, %v160_v13  ;;  %v1692_v17 = vpop.f32.mrb[3].mxu0  ;;  %vm169_vm2 = vcmp.ge.f32.partialorder %v160_v13, 0.0 }
 0x138   :  { %v166_v18 = vsub.f32 0.0, %v165_v16 }
 0x13a   :  { %v167_v19 = vmul.f32 1.442695, %v166_v18 }
 0x13c   :  { %1926 = vpow2.f32 %v167_v19 }
 0x146   :  { %v1927_v20 = vpop.eup %1926 }
 0x147   :  { %v170_v21 = vmul.f32 2.0, %v1927_v20  ;;  %v172_v22 = vadd.f32 2.0, %v1927_v20  ;;  %v175_v23 = vmul.f32 %v1927_v20, %v1927_v20 }
 0x149   :  { %v171_v24 = vadd.f32 1.0, %v170_v21  ;;  %v173_v25 = vmul.f32 %v1927_v20, %v172_v22  ;;  %v176_v26 = vsel %vm169_vm2, %v175_v23, 1.0 }
 0x14a   :  { %v177_v27 = vmul.f32 2.0, %v176_v26 }
 0x14b   :  { %v174_v28 = vsel %vm169_vm2, %v171_v24, %v173_v25 }
 0x14c   :  { %v178_v29 = vadd.f32 %v177_v27, %v174_v28  ;;  %v179_v30 = vmul.f32 %v174_v28, %v160_v13 }
 0x14e   :  { %1928 = vrcp.f32 %v178_v29 }
 0x158   :  { %v1929_v31 = vpop.eup %1928 }
 0x159   :  { %v181_v32 = vmul.f32 %v1929_v31, %v179_v30 }
 0x15b   :  { %v182_v33 = vpack.c.bf16 %v181_v32, %v181_v32  ;;  %v1792_v32 = vld [vmem:[#allocation6 + $0x4] ss:$8 sps:$4 sm:$0xff]  }
 0x15c   :  { %682 = vmatprep.subr.bf16.mxu0 %v1792_v32  ;;  %v1852_v32 = vld [vmem:[#allocation7 + $0xc4] ss:$8 sps:$4 sm:$0xff]  }
 0x15d   :  { %1710 = vmatmul.mubr.bf16.vlgmr.msra.gmra.mrb[0].mxu1 %v182_v33  ;;  %v1790_v33 = vld [vmem:[#allocation6] ss:$8 sps:$4 sm:$0xff]  }
 0x15e   :  { %1749 = vmatprep.mubr.msk.bf16.mxu1 %vm2092_vm0, %v2091_v0  ;;  %1734 = vmatpush3.bf16.msra.mxu1 %v1782_v2 }
 0x15f   :  { %1735 = vmatprep.subr.bf16.mxu1 %v2091_v0 }
 0x162   :  { %1736 = vmatpush3.bf16.msra.mxu1 %v1783_v3 }
 0x163   :  { %1737 = vmatprep.subr.bf16.mxu1 %v2091_v0 }
 0x166   :  { %1738 = vmatpush3.bf16.msra.mxu1 %v1784_v4 }
 0x167   :  { %1739 = vmatprep.subr.bf16.mxu1 %v2091_v0 }
 0x16a   :  { %1740 = vmatpush3.bf16.msra.mxu1 %v1785_v5 }
 0x16b   :  { %1741 = vmatprep.subr.bf16.mxu1 %v2091_v0 }
 0x16e   :  { %1742 = vmatpush3.bf16.msra.mxu1 %v1786_v6 }
 0x16f   :  { %1743 = vmatprep.subr.bf16.mxu1 %v2091_v0 }
 0x172   :  { %1744 = vmatpush3.bf16.msra.mxu1 %v1787_v7 }
 0x173   :  { %1745 = vmatprep.subr.bf16.mxu1 %v2091_v0 }
 0x176   :  { %1746 = vmatpush3.bf16.msra.mxu1 %v1788_v8 }
 0x177   :  { %1747 = vmatprep.subr.bf16.mxu1 %v2091_v0 }
 0x17a   :  { %1748 = vmatpush3.bf16.msra.mxu1 %v1789_v9 }
 0x230   :  { %v288_v43 = vpop.f32.mrb[0].mxu1 }
 0x231   :  { %v289_v44 = vadd.f32 %v1509_v42, %v288_v43  ;;  %v1711_v45 = vpop.f32.mrb[1].mxu1  ;;  %v1807_v42 = vld [vmem:[#allocation6 + $0x54] ss:$8 sps:$4 sm:$0xff]   ;;  %v1805_v43 = vld [vmem:[#allocation6 + $0x50] ss:$8 sps:$4 sm:$0xff]  }
 0x232   :  { %v291_v46 = vpop.f32.mrb[2].mxu1  ;;  %v1808_v45 = vld [vmem:[#allocation6 + $0x60] ss:$8 sps:$4 sm:$0xff]  }
 0x233   :  { %v294_v47 = vand.u32 2147483647, %v289_v44  ;;  %v1712_v48 = vpop.f32.mrb[3].mxu1  ;;  %vm298_vm3 = vcmp.ge.f32.partialorder %v289_v44, 0.0  ;;  %v1813_v46 = vld [vmem:[#allocation6 + $0x74] ss:$8 sps:$4 sm:$0xff]  }
 0x234   :  { %v2093_v48 = vmov 0  }
 0x235   :  { %v295_v49 = vsub.f32 0.0, %v294_v47  ;;  %v1811_v47 = vld [vmem:[#allocation6 + $0x70] ss:$8 sps:$4 sm:$0xff]  }
 0x237   :  { %v296_v50 = vmul.f32 1.442695, %v295_v49  ;;  %v1814_v49 = vld [vmem:[#allocation7] ss:$8 sps:$4 sm:$0xff]  }
 0x239   :  { %1930 = vpow2.f32 %v296_v50  ;;  %v1816_v50 = vld [vmem:[#allocation7 + $0x4] ss:$8 sps:$4 sm:$0xff]  }
 0x23a   :  { %963 = vmatprep.subr.bf16.mxu1 %v1816_v50  ;;  %v592_v50 = vlaneseq }
 0x243   :  { %v1931_v51 = vpop.eup %1930 }
 0x244   :  { %v299_v52 = vmul.f32 2.0, %v1931_v51  ;;  %v301_v53 = vadd.f32 2.0, %v1931_v51  ;;  %v304_v54 = vmul.f32 %v1931_v51, %v1931_v51 }
 0x246   :  { %v300_v55 = vadd.f32 1.0, %v299_v52  ;;  %v302_v56 = vmul.f32 %v1931_v51, %v301_v53  ;;  %v305_v57 = vsel %vm298_vm3, %v304_v54, 1.0  ;;  %v1819_v51 = vld [vmem:[#allocation7 + $0x14] ss:$8 sps:$4 sm:$0xff]   ;;  %v1817_v52 = vld [vmem:[#allocation7 + $0x10] ss:$8 sps:$4 sm:$0xff]  }
 0x247   :  { %v306_v58 = vmul.f32 2.0, %v305_v57  ;;  %v1822_v53 = vld [vmem:[#allocation7 + $0x24] ss:$8 sps:$4 sm:$0xff]   ;;  %v1820_v54 = vld [vmem:[#allocation7 + $0x20] ss:$8 sps:$4 sm:$0xff]  }
 0x248   :  { %v303_v59 = vsel %vm298_vm3, %v300_v55, %v302_v56  ;;  %v1825_v55 = vld [vmem:[#allocation7 + $0x34] ss:$8 sps:$4 sm:$0xff]   ;;  %v1823_v56 = vld [vmem:[#allocation7 + $0x30] ss:$8 sps:$4 sm:$0xff]   ;;  %v1828_v57 = vld [vmem:[#allocation7 + $0x44] ss:$8 sps:$4 sm:$0xff]  }
 0x249   :  { %v307_v60 = vadd.f32 %v306_v58, %v303_v59  ;;  %v308_v61 = vmul.f32 %v303_v59, %v289_v44  ;;  %v1810_v44 = vld [vmem:[#allocation6 + $0x64] ss:$8 sps:$4 sm:$0xff]   ;;  %v1826_v58 = vld [vmem:[#allocation7 + $0x40] ss:$8 sps:$4 sm:$0xff]  }
 0x24a   :  { %v1529_v59 = vld [vmem:[%s2303_s4 + $0x2] ss:$0 sm:$0xff] }
 0x24b   :  { %1932 = vrcp.f32 %v307_v60 }
 0x255   :  { %v1933_v62 = vpop.eup %1932 }
 0x256   :  { %v310_v63 = vmul.f32 %v1933_v62, %v308_v61 }
 0x258   :  { %v311_v1 = vpack.c.bf16 %v310_v63, %v310_v63 }
 0x25a   :  { %1730 = vmatmul.mubr.bf16.vlgmr.msra.gmra.mrb[4].mxu0 %v311_v1 }
 0x25b   :  { %683 = vmatpush1.bf16.msra.mxu0 %v1790_v33  ;;  %714 = vmatprep.mubr.bf16.mxu0 %v2093_v48  ;;  %v1850_v33 = vld [vmem:[#allocation7 + $0xc0] ss:$8 sps:$4 sm:$0xff]   ;;  %v1876_v48 = vld [vmem:[#allocation7 + $0x144] ss:$8 sps:$4 sm:$0xff]  }
 0x25c   :  { %684 = vmatprep.subr.bf16.mxu0 %v1795_v34  ;;  %v1855_v34 = vld [vmem:[#allocation7 + $0xd4] ss:$8 sps:$4 sm:$0xff]  }
 0x25f   :  { %685 = vmatpush1.bf16.msra.mxu0 %v1793_v35  ;;  %v1853_v35 = vld [vmem:[#allocation7 + $0xd0] ss:$8 sps:$4 sm:$0xff]  }
 0x260   :  { %686 = vmatprep.subr.bf16.mxu0 %v1798_v36  ;;  %v1858_v36 = vld [vmem:[#allocation7 + $0xe4] ss:$8 sps:$4 sm:$0xff]  }
 0x263   :  { %687 = vmatpush1.bf16.msra.mxu0 %v1796_v37  ;;  %v1856_v37 = vld [vmem:[#allocation7 + $0xe0] ss:$8 sps:$4 sm:$0xff]  }
 0x264   :  { %688 = vmatprep.subr.bf16.mxu0 %v1801_v38  ;;  %v1859_v38 = vld [vmem:[#allocation7 + $0xf0] ss:$8 sps:$4 sm:$0xff]  }
 0x267   :  { %689 = vmatpush1.bf16.msra.mxu0 %v1799_v39  ;;  %v1861_v39 = vld [vmem:[#allocation7 + $0xf4] ss:$8 sps:$4 sm:$0xff]  }
 0x268   :  { %690 = vmatprep.subr.bf16.mxu0 %v1804_v40  ;;  %v1862_v40 = vld [vmem:[#allocation7 + $0x100] ss:$8 sps:$4 sm:$0xff]  }
 0x26b   :  { %691 = vmatpush1.bf16.msra.mxu0 %v1802_v41  ;;  %v1864_v41 = vld [vmem:[#allocation7 + $0x104] ss:$8 sps:$4 sm:$0xff]  }
 0x26c   :  { %692 = vmatprep.subr.bf16.mxu0 %v1807_v42  ;;  %v1867_v42 = vld [vmem:[#allocation7 + $0x114] ss:$8 sps:$4 sm:$0xff]  }
 0x26f   :  { %693 = vmatpush1.bf16.msra.mxu0 %v1805_v43  ;;  %v1865_v43 = vld [vmem:[#allocation7 + $0x110] ss:$8 sps:$4 sm:$0xff]  }
 0x270   :  { %694 = vmatprep.subr.bf16.mxu0 %v1810_v44  ;;  %v1870_v44 = vld [vmem:[#allocation7 + $0x124] ss:$8 sps:$4 sm:$0xff]  }
 0x273   :  { %695 = vmatpush1.bf16.msra.mxu0 %v1808_v45  ;;  %v1868_v45 = vld [vmem:[#allocation7 + $0x120] ss:$8 sps:$4 sm:$0xff]  }
 0x274   :  { %696 = vmatprep.subr.bf16.mxu0 %v1813_v46  ;;  %v1873_v46 = vld [vmem:[#allocation7 + $0x134] ss:$8 sps:$4 sm:$0xff]  }
 0x277   :  { %697 = vmatpush1.bf16.msra.mxu0 %v1811_v47  ;;  %v1871_v47 = vld [vmem:[#allocation7 + $0x130] ss:$8 sps:$4 sm:$0xff]  }
 0x278   :  { %1246 = vmatprep.subr.bf16.mxu0 %v1864_v41  ;;  %v1891_v41 = vld [vmem:[#allocation7 + $0x194] ss:$8 sps:$4 sm:$0xff]  }
 0x32d   :  { %v419_v11 = vpop.f32.mrb[4].mxu0 }
 0x32e   :  { %v420_v12 = vadd.f32 %v1519_v10, %v419_v11  ;;  %v1731_v13 = vpop.f32.mrb[5].mxu0 }
 0x32f   :  { %v422_v14 = vpop.f32.mrb[6].mxu0 }
 0x330   :  { %v425_v15 = vand.u32 2147483647, %v420_v12  ;;  %v1732_v16 = vpop.f32.mrb[7].mxu0  ;;  %vm429_vm4 = vcmp.ge.f32.partialorder %v420_v12, 0.0 }
 0x332   :  { %v426_v17 = vsub.f32 0.0, %v425_v15 }
 0x334   :  { %v427_v18 = vmul.f32 1.442695, %v426_v17 }
 0x336   :  { %1934 = vpow2.f32 %v427_v18 }
 0x340   :  { %v1935_v19 = vpop.eup %1934 }
 0x341   :  { %v430_v20 = vmul.f32 2.0, %v1935_v19  ;;  %v432_v21 = vadd.f32 2.0, %v1935_v19  ;;  %v435_v22 = vmul.f32 %v1935_v19, %v1935_v19 }
 0x343   :  { %v431_v0 = vadd.f32 1.0, %v430_v20  ;;  %v433_v23 = vmul.f32 %v1935_v19, %v432_v21  ;;  %v436_v24 = vsel %vm429_vm4, %v435_v22, 1.0  ;;  %v1831_v19 = vld [vmem:[#allocation7 + $0x54] ss:$8 sps:$4 sm:$0xff]   ;;  %v1829_v20 = vld [vmem:[#allocation7 + $0x50] ss:$8 sps:$4 sm:$0xff]  }
 0x344   :  { %v437_v25 = vmul.f32 2.0, %v436_v24  ;;  %v1834_v21 = vld [vmem:[#allocation7 + $0x64] ss:$8 sps:$4 sm:$0xff]   ;;  %v1832_v22 = vld [vmem:[#allocation7 + $0x60] ss:$8 sps:$4 sm:$0xff]  }
 0x345   :  { %v434_v26 = vsel %vm429_vm4, %v431_v0, %v433_v23  ;;  %v1837_v0 = vld [vmem:[#allocation7 + $0x74] ss:$8 sps:$4 sm:$0xff]   ;;  %v1835_v23 = vld [vmem:[#allocation7 + $0x70] ss:$8 sps:$4 sm:$0xff]   ;;  %v1840_v24 = vld [vmem:[#allocation7 + $0x84] ss:$8 sps:$4 sm:$0xff]  }
 0x346   :  { %v438_v27 = vadd.f32 %v437_v25, %v434_v26  ;;  %v439_v28 = vmul.f32 %v434_v26, %v420_v12  ;;  %v1838_v25 = vld [vmem:[#allocation7 + $0x80] ss:$8 sps:$4 sm:$0xff]   ;;  %v1843_v26 = vld [vmem:[#allocation7 + $0x94] ss:$8 sps:$4 sm:$0xff]  }
 0x348   :  { %1936 = vrcp.f32 %v438_v27  ;;  %v1841_v27 = vld [vmem:[#allocation7 + $0x90] ss:$8 sps:$4 sm:$0xff]  }
 0x352   :  { %v1937_v29 = vpop.eup %1936 }
 0x353   :  { %v441_v30 = vmul.f32 %v1937_v29, %v439_v28  ;;  %v1846_v28 = vld [vmem:[#allocation7 + $0xa4] ss:$8 sps:$4 sm:$0xff]   ;;  %v1844_v29 = vld [vmem:[#allocation7 + $0xa0] ss:$8 sps:$4 sm:$0xff]  }
 0x355   :  { %v442_v31 = vpack.c.bf16 %v441_v30, %v441_v30  ;;  %v1849_v30 = vld [vmem:[#allocation7 + $0xb4] ss:$8 sps:$4 sm:$0xff]  }
 0x357   :  { %1750 = vmatmul.mubr.bf16.vlgmr.msra.gmra.mrb[4].mxu1 %v442_v31  ;;  %v1847_v31 = vld [vmem:[#allocation7 + $0xb0] ss:$8 sps:$4 sm:$0xff]  }
 0x358   :  { %964 = vmatpush1.bf16.msra.mxu1 %v1814_v49  ;;  %v1874_v49 = vld [vmem:[#allocation7 + $0x140] ss:$8 sps:$4 sm:$0xff]  }
 0x359   :  { %965 = vmatprep.subr.bf16.mxu1 %v1819_v51  ;;  %v593_v51 = vshrl.u32 %v592_v50, 7  ;;  %v1901_v50 = vld [vmem:[#allocation7 + $0x1d0] ss:$8 sps:$4 sm:$0xff]  }
 0x35c   :  { %966 = vmatpush1.bf16.msra.mxu1 %v1817_v52  ;;  %v2274_v52 = vsub.s32 0, %v593_v51 }
 0x35d   :  { %967 = vmatprep.subr.bf16.mxu1 %v1822_v53  ;;  %v590_v53 = vld [vmem:[%s2305_s6] sm:$0x3] }
 0x360   :  { %968 = vmatpush1.bf16.msra.mxu1 %v1820_v54  ;;  %v2279_v54 = vsub.s32 1, %v593_v51  ;;  %v1906_v51 = vld [vmem:[#allocation7 + $0x1e4] ss:$8 sps:$4 sm:$0xff]  }
 0x361   :  { %969 = vmatprep.subr.bf16.mxu1 %v1825_v55  ;;  %v595_v55 = vrot.slane %v590_v53, %v2274_v52 }
 0x364   :  { %970 = vmatpush1.bf16.msra.mxu1 %v1823_v56  ;;  %v599_v56 = vrot.slane %v590_v53, %v2279_v54  ;;  %v1904_v53 = vld [vmem:[#allocation7 + $0x1e0] ss:$8 sps:$4 sm:$0xff]  }
 0x365   :  { %971 = vmatprep.subr.bf16.mxu1 %v1828_v57 }
 0x368   :  { %972 = vmatpush1.bf16.msra.mxu1 %v1826_v58 }
 0x369   :  { %973 = vmatprep.subr.bf16.mxu1 %v1831_v19 }
 0x36c   :  { %974 = vmatpush1.bf16.msra.mxu1 %v1829_v20 }
 0x36d   :  { %975 = vmatprep.subr.bf16.mxu1 %v1834_v21 }
 0x370   :  { %976 = vmatpush1.bf16.msra.mxu1 %v1832_v22 }
 0x371   :  { %977 = vmatprep.subr.bf16.mxu1 %v1837_v0 }
 0x374   :  { %978 = vmatpush1.bf16.msra.mxu1 %v1835_v23 }
 0x375   :  { %979 = vmatprep.subr.bf16.mxu1 %v1840_v24 }
 0x378   :  { %980 = vmatpush1.bf16.msra.mxu1 %v1838_v25 }
 0x379   :  { %981 = vmatprep.subr.bf16.mxu1 %v1843_v26 }
 0x37c   :  { %982 = vmatpush1.bf16.msra.mxu1 %v1841_v27 }
 0x37d   :  { %983 = vmatprep.subr.bf16.mxu1 %v1846_v28 }
 0x380   :  { %984 = vmatpush1.bf16.msra.mxu1 %v1844_v29 }
 0x381   :  { %985 = vmatprep.subr.bf16.mxu1 %v1849_v30 }
 0x384   :  { %986 = vmatpush1.bf16.msra.mxu1 %v1847_v31 }
 0x385   :  { %987 = vmatprep.subr.bf16.mxu1 %v1852_v32 }
 0x388   :  { %988 = vmatpush1.bf16.msra.mxu1 %v1850_v33  ;;  %v1879_v33 = vld [vmem:[#allocation7 + $0x154] ss:$8 sps:$4 sm:$0xff]  }
 0x389   :  { %989 = vmatprep.subr.bf16.mxu1 %v1855_v34  ;;  %v1877_v34 = vld [vmem:[#allocation7 + $0x150] ss:$8 sps:$4 sm:$0xff]  }
 0x38c   :  { %990 = vmatpush1.bf16.msra.mxu1 %v1853_v35  ;;  %v1882_v35 = vld [vmem:[#allocation7 + $0x164] ss:$8 sps:$4 sm:$0xff]  }
 0x38d   :  { %991 = vmatprep.subr.bf16.mxu1 %v1858_v36  ;;  %v1880_v36 = vld [vmem:[#allocation7 + $0x160] ss:$8 sps:$4 sm:$0xff]  }
 0x390   :  { %992 = vmatpush1.bf16.msra.mxu1 %v1856_v37  ;;  %v1885_v37 = vld [vmem:[#allocation7 + $0x174] ss:$8 sps:$4 sm:$0xff]  }
 0x391   :  { %993 = vmatprep.subr.bf16.mxu1 %v1861_v39  ;;  %v1888_v39 = vld [vmem:[#allocation7 + $0x184] ss:$8 sps:$4 sm:$0xff]  }
 0x394   :  { %994 = vmatpush1.bf16.msra.mxu1 %v1859_v38  ;;  %v1883_v38 = vld [vmem:[#allocation7 + $0x170] ss:$8 sps:$4 sm:$0xff]  }
 0x42a   :  { %v550_v60 = vpop.f32.mrb[4].mxu1 }
 0x42b   :  { %v551_v61 = vadd.f32 %v1529_v59, %v550_v60  ;;  %v1751_v62 = vpop.f32.mrb[5].mxu1 }
 0x42c   :  { %v553_v63 = vpop.f32.mrb[6].mxu1 }
 0x42d   :  { %v556_v1 = vand.u32 2147483647, %v551_v61  ;;  %v1752_v2 = vpop.f32.mrb[7].mxu1  ;;  %vm560_vm5 = vcmp.ge.f32.partialorder %v551_v61, 0.0 }
 0x42f   :  { %v557_v3 = vsub.f32 0.0, %v556_v1 }
 0x431   :  { %v558_v4 = vmul.f32 1.442695, %v557_v3 }
 0x433   :  { %1938 = vpow2.f32 %v558_v4 }
 0x43d   :  { %v1939_v5 = vpop.eup %1938 }
 0x43e   :  { %v561_v6 = vmul.f32 2.0, %v1939_v5  ;;  %v563_v7 = vadd.f32 2.0, %v1939_v5  ;;  %v566_v8 = vmul.f32 %v1939_v5, %v1939_v5 }
 0x440   :  { %v562_v9 = vadd.f32 1.0, %v561_v6  ;;  %v564_v10 = vmul.f32 %v1939_v5, %v563_v7  ;;  %v567_v11 = vsel %vm560_vm5, %v566_v8, 1.0 }
 0x441   :  { %v568_v12 = vmul.f32 2.0, %v567_v11 }
 0x442   :  { %v565_v13 = vsel %vm560_vm5, %v562_v9, %v564_v10 }
 0x443   :  { %v569_v14 = vadd.f32 %v568_v12, %v565_v13  ;;  %v570_v15 = vmul.f32 %v565_v13, %v551_v61 }
 0x445   :  { %1940 = vrcp.f32 %v569_v14 }
 0x44f   :  { %v1941_v16 = vpop.eup %1940 }
 0x450   :  { %v572_v17 = vmul.f32 %v1941_v16, %v570_v15 }
 0x452   :  { %v573_v18 = vpack.c.bf16 %v572_v17, %v572_v17 }
 0x454   :  { %715 = vmatmul.mubr.bf16.vlgmr.msra.gmra.mrb[8].mxu0 %v573_v18 }
 0x455   :  { %1247 = vmatpush1.bf16.msra.mxu0 %v1862_v40  ;;  %v1886_v40 = vld [vmem:[#allocation7 + $0x180] ss:$8 sps:$4 sm:$0xff]  }
 0x456   :  { %1248 = vmatprep.subr.bf16.mxu0 %v1867_v42  ;;  %v1889_v42 = vld [vmem:[#allocation7 + $0x190] ss:$8 sps:$4 sm:$0xff]  }
 0x459   :  { %1249 = vmatpush1.bf16.msra.mxu0 %v1865_v43  ;;  %v1894_v43 = vld [vmem:[#allocation7 + $0x1a4] ss:$8 sps:$4 sm:$0xff]  }
 0x45a   :  { %1250 = vmatprep.subr.bf16.mxu0 %v1870_v44  ;;  %v1892_v44 = vld [vmem:[#allocation7 + $0x1a0] ss:$8 sps:$4 sm:$0xff]  }
 0x45d   :  { %1251 = vmatpush1.bf16.msra.mxu0 %v1868_v45  ;;  %v1897_v45 = vld [vmem:[#allocation7 + $0x1b4] ss:$8 sps:$4 sm:$0xff]  }
 0x45e   :  { %1252 = vmatprep.subr.bf16.mxu0 %v1873_v46  ;;  %v1895_v46 = vld [vmem:[#allocation7 + $0x1b0] ss:$8 sps:$4 sm:$0xff]  }
 0x461   :  { %1253 = vmatpush1.bf16.msra.mxu0 %v1871_v47  ;;  %v1900_v47 = vld [vmem:[#allocation7 + $0x1c4] ss:$8 sps:$4 sm:$0xff]  }
 0x462   :  { %1254 = vmatprep.subr.bf16.mxu0 %v1876_v48  ;;  %v1898_v48 = vld [vmem:[#allocation7 + $0x1c0] ss:$8 sps:$4 sm:$0xff]  }
 0x465   :  { %1255 = vmatpush1.bf16.msra.mxu0 %v1874_v49  ;;  %v1903_v49 = vld [vmem:[#allocation7 + $0x1d4] ss:$8 sps:$4 sm:$0xff]  }
 0x466   :  { %1256 = vmatprep.subr.bf16.mxu0 %v1879_v33 }
 0x469   :  { %1257 = vmatpush1.bf16.msra.mxu0 %v1877_v34 }
 0x46a   :  { %1258 = vmatprep.subr.bf16.mxu0 %v1882_v35 }
 0x46d   :  { %1259 = vmatpush1.bf16.msra.mxu0 %v1880_v36  ;;  %v1910_v36 = vld [vmem:[#allocation9 + $0x40] sm:$0xff]  }
 0x46e   :  { %1260 = vmatprep.subr.bf16.mxu0 %v1885_v37  ;;  %v1911_v37 = vld [vmem:[#allocation9] sm:$0xff]   ;;  %1665 = vmatprep.subr.bf16.mxu1 %v1910_v36 }
 0x471   :  { %1261 = vmatpush1.bf16.msra.mxu0 %v1883_v38  ;;  %v1912_v38 = vld [vmem:[#allocation9 + $0x48] sm:$0xff]  }
 0x472   :  { %1262 = vmatprep.subr.bf16.mxu0 %v1888_v39  ;;  %v1913_v39 = vld [vmem:[#allocation9 + $0x8] sm:$0xff]  }
 0x475   :  { %1263 = vmatpush1.bf16.msra.mxu0 %v1886_v40  ;;  %v1914_v40 = vld [vmem:[#allocation9 + $0x50] sm:$0xff]  }
 0x476   :  { %1264 = vmatprep.subr.bf16.mxu0 %v1891_v41  ;;  %v1915_v41 = vld [vmem:[#allocation9 + $0x10] sm:$0xff]  }
 0x479   :  { %1265 = vmatpush1.bf16.msra.mxu0 %v1889_v42  ;;  %v1916_v42 = vld [vmem:[#allocation9 + $0x58] sm:$0xff]  }
 0x47a   :  { %1266 = vmatprep.subr.bf16.mxu0 %v1894_v43  ;;  %v1917_v43 = vld [vmem:[#allocation9 + $0x18] sm:$0xff]  }
 0x47d   :  { %1267 = vmatpush1.bf16.msra.mxu0 %v1892_v44  ;;  %v1918_v44 = vld [vmem:[#allocation9 + $0x60] sm:$0xff]  }
 0x47e   :  { %1268 = vmatprep.subr.bf16.mxu0 %v1897_v45  ;;  %v1919_v45 = vld [vmem:[#allocation9 + $0x20] sm:$0xff]  }
 0x481   :  { %1269 = vmatpush1.bf16.msra.mxu0 %v1895_v46  ;;  %v1920_v46 = vld [vmem:[#allocation9 + $0x68] sm:$0xff]  }
 0x482   :  { %1270 = vmatprep.subr.bf16.mxu0 %v1900_v47  ;;  %v1921_v47 = vld [vmem:[#allocation9 + $0x28] sm:$0xff]  }
 0x485   :  { %1271 = vmatpush1.bf16.msra.mxu0 %v1898_v48  ;;  %v1922_v48 = vld [vmem:[#allocation9 + $0x70] sm:$0xff]  }
 0x486   :  { %1272 = vmatprep.subr.bf16.mxu0 %v1903_v49  ;;  %v1923_v49 = vld [vmem:[#allocation9 + $0x30] sm:$0xff]  }
 0x489   :  { %1273 = vmatpush1.bf16.msra.mxu0 %v1901_v50  ;;  %v1924_v50 = vld [vmem:[#allocation9 + $0x78] sm:$0xff]  }
 0x48a   :  { %1274 = vmatprep.subr.bf16.mxu0 %v1906_v51  ;;  %v1925_v51 = vld [vmem:[#allocation9 + $0x38] sm:$0xff]  }
 0x48d   :  { %1275 = vmatpush1.bf16.msra.mxu0 %v1904_v53  ;;  %v1586_v53 = vld [vmem:[%s2307_s8 + $0x2] sm:$0x3] }
 0x527   :  { %v716_v57 = vpop.f32.mrb[8].mxu0 }
 0x528   :  { %v717_v58 = vadd.f32 %v716_v57, %v595_v55  ;;  %v718_v59 = vpop.f32.mrb[9].mxu0  ;;  %v1907_v55 = vld [vmem:[#allocation7 + $0x1f0] ss:$8 sps:$4 sm:$0xff]   ;;  %v791_v57 = vld [vmem:[%s2307_s8] sm:$0x3] }
 0x529   :  { %v719_v60 = vadd.f32 %v718_v59, %v599_v56  ;;  %v720_v61 = vpop.f32.mrb[10].mxu0  ;;  %v1909_v56 = vld [vmem:[#allocation7 + $0x1f4] ss:$8 sps:$4 sm:$0xff]   ;;  %v800_v59 = vrot.slane %v791_v57, %v2279_v54 }
 0x52a   :  { %v723_v62 = vand.u32 2147483647, %v717_v58  ;;  %v721_v63 = vpop.f32.mrb[11].mxu0  ;;  %vm731_vm6 = vcmp.ge.f32.partialorder %v717_v58, 0.0  ;;  %1276 = vmatprep.subr.bf16.mxu0 %v1909_v56  ;;  %v1083_v56 = vrot.slane %v1586_v53, %v2279_v54 }
 0x52b   :  { %v724_v1 = vand.u32 2147483647, %v719_v60  ;;  %vm732_vm7 = vcmp.ge.f32.partialorder %v719_v60, 0.0  ;;  %1277 = vmatpush1.bf16.msra.mxu0 %v1907_v55  ;;  %v1079_v55 = vrot.slane %v1586_v53, %v2274_v52 }
 0x52c   :  { %v725_v2 = vsub.f32 0.0, %v723_v62 }
 0x52d   :  { %v726_v3 = vsub.f32 0.0, %v724_v1 }
 0x52e   :  { %v727_v4 = vmul.f32 1.442695, %v725_v2 }
 0x52f   :  { %v729_v5 = vmul.f32 1.442695, %v726_v3 }
 0x530   :  { %1942 = vpow2.f32 %v727_v4 }
 0x531   :  { %1944 = vpow2.f32 %v729_v5 }
 0x53a   :  { %v1943_v6 = vpop.eup %1942 }
 0x53b   :  { %v1945_v7 = vpop.eup %1944  ;;  %v733_v8 = vmul.f32 2.0, %v1943_v6  ;;  %v737_v9 = vadd.f32 2.0, %v1943_v6  ;;  %v743_v10 = vmul.f32 %v1943_v6, %v1943_v6 }
 0x53c   :  { %v734_v11 = vmul.f32 2.0, %v1945_v7  ;;  %v738_v12 = vadd.f32 2.0, %v1945_v7  ;;  %v744_v13 = vmul.f32 %v1945_v7, %v1945_v7 }
 0x53d   :  { %v735_v14 = vadd.f32 1.0, %v733_v8  ;;  %v739_v15 = vmul.f32 %v1943_v6, %v737_v9  ;;  %v745_v16 = vsel %vm731_vm6, %v743_v10, 1.0 }
 0x53e   :  { %v747_v17 = vmul.f32 2.0, %v745_v16  ;;  %v736_v18 = vadd.f32 1.0, %v734_v11  ;;  %v740_v19 = vmul.f32 %v1945_v7, %v738_v12  ;;  %v746_v20 = vsel %vm732_vm7, %v744_v13, 1.0 }
 0x53f   :  { %v741_v21 = vsel %vm731_vm6, %v735_v14, %v739_v15  ;;  %v748_v22 = vmul.f32 2.0, %v746_v20 }
 0x540   :  { %v749_v0 = vadd.f32 %v747_v17, %v741_v21  ;;  %v742_v23 = vsel %vm732_vm7, %v736_v18, %v740_v19  ;;  %v751_v25 = vmul.f32 %v741_v21, %v717_v58  ;;  %v796_v58 = vrot.slane %v791_v57, %v2274_v52 }
 0x541   :  { %v750_v24 = vadd.f32 %v748_v22, %v742_v23  ;;  %v752_v27 = vmul.f32 %v742_v23, %v719_v60 }
 0x542   :  { %1946 = vrcp.f32 %v749_v0 }
 0x543   :  { %1948 = vrcp.f32 %v750_v24 }
 0x54c   :  { %v1947_v26 = vpop.eup %1946 }
 0x54d   :  { %v1949_v28 = vpop.eup %1948  ;;  %v755_v29 = vmul.f32 %v1947_v26, %v751_v25 }
 0x54e   :  { %v756_v30 = vmul.f32 %v1949_v28, %v752_v27 }
 0x54f   :  { %v757_v32 = vpack.c.bf16 %v755_v29, %v755_v29 }
 0x550   :  { %v758_v31 = vpack.c.bf16 %v756_v30, %v756_v30 }
 0x552   :  { %995 = vmatprep.mubr.bf16.mxu1 %v758_v31 }
 0x553   :  { %996 = vmatmul.mubr.bf16.vlgmr.msra.gmra.mrb[8].mxu1 %v757_v32 }
 0x554   :  { %1666 = vmatpush3.bf16.msra.mxu1 %v1911_v37 }
 0x555   :  { %1667 = vmatprep.subr.bf16.mxu1 %v1912_v38 }
 0x558   :  { %1668 = vmatpush3.bf16.msra.mxu1 %v1913_v39 }
 0x559   :  { %1669 = vmatprep.subr.bf16.mxu1 %v1914_v40 }
 0x55c   :  { %1670 = vmatpush3.bf16.msra.mxu1 %v1915_v41 }
 0x55d   :  { %1671 = vmatprep.subr.bf16.mxu1 %v1916_v42 }
 0x560   :  { %1672 = vmatpush3.bf16.msra.mxu1 %v1917_v43 }
 0x561   :  { %1673 = vmatprep.subr.bf16.mxu1 %v1918_v44 }
 0x564   :  { %1674 = vmatpush3.bf16.msra.mxu1 %v1919_v45 }
 0x565   :  { %1675 = vmatprep.subr.bf16.mxu1 %v1920_v46 }
 0x568   :  { %1676 = vmatpush3.bf16.msra.mxu1 %v1921_v47 }
 0x569   :  { %1677 = vmatprep.subr.bf16.mxu1 %v1922_v48 }
 0x56c   :  { %1678 = vmatpush3.bf16.msra.mxu1 %v1923_v49 }
 0x56d   :  { %1679 = vmatprep.subr.bf16.mxu1 %v1924_v50 }
 0x570   :  { %1680 = vmatpush3.bf16.msra.mxu1 %v1925_v51 }
 0x626   :  { %v997_v60 = vpop.f32.mrb[8].mxu1 }
 0x627   :  { %v998_v61 = vadd.f32 %v997_v60, %v796_v58  ;;  %v999_v62 = vpop.f32.mrb[9].mxu1 }
 0x628   :  { %v1000_v63 = vadd.f32 %v999_v62, %v800_v59  ;;  %v1001_v1 = vpop.f32.mrb[10].mxu1 }
 0x629   :  { %v1004_v2 = vand.u32 2147483647, %v998_v61  ;;  %v1002_v3 = vpop.f32.mrb[11].mxu1  ;;  %vm1012_vm8 = vcmp.ge.f32.partialorder %v998_v61, 0.0 }
 0x62a   :  { %v1005_v4 = vand.u32 2147483647, %v1000_v63  ;;  %vm1013_vm9 = vcmp.ge.f32.partialorder %v1000_v63, 0.0 }
 0x62b   :  { %v1006_v5 = vsub.f32 0.0, %v1004_v2 }
 0x62c   :  { %v1007_v6 = vsub.f32 0.0, %v1005_v4 }
 0x62d   :  { %v1008_v7 = vmul.f32 1.442695, %v1006_v5 }
 0x62e   :  { %v1010_v8 = vmul.f32 1.442695, %v1007_v6 }
 0x62f   :  { %1950 = vpow2.f32 %v1008_v7 }
 0x630   :  { %1952 = vpow2.f32 %v1010_v8 }
 0x639   :  { %v1951_v9 = vpop.eup %1950 }
 0x63a   :  { %v1953_v10 = vpop.eup %1952  ;;  %v1014_v11 = vmul.f32 2.0, %v1951_v9  ;;  %v1018_v12 = vadd.f32 2.0, %v1951_v9  ;;  %v1024_v13 = vmul.f32 %v1951_v9, %v1951_v9 }
 0x63b   :  { %v1015_v14 = vmul.f32 2.0, %v1953_v10  ;;  %v1019_v15 = vadd.f32 2.0, %v1953_v10  ;;  %v1025_v16 = vmul.f32 %v1953_v10, %v1953_v10 }
 0x63c   :  { %v1016_v17 = vadd.f32 1.0, %v1014_v11  ;;  %v1020_v18 = vmul.f32 %v1951_v9, %v1018_v12  ;;  %v1026_v19 = vsel %vm1012_vm8, %v1024_v13, 1.0 }
 0x63d   :  { %v1028_v20 = vmul.f32 2.0, %v1026_v19  ;;  %v1017_v21 = vadd.f32 1.0, %v1015_v14  ;;  %v1021_v22 = vmul.f32 %v1953_v10, %v1019_v15  ;;  %v1027_v0 = vsel %vm1013_vm9, %v1025_v16, 1.0 }
 0x63e   :  { %v1022_v23 = vsel %vm1012_vm8, %v1016_v17, %v1020_v18  ;;  %v1029_v24 = vmul.f32 2.0, %v1027_v0 }
 0x63f   :  { %v1030_v25 = vadd.f32 %v1028_v20, %v1022_v23  ;;  %v1023_v26 = vsel %vm1013_vm9, %v1017_v21, %v1021_v22  ;;  %v1032_v28 = vmul.f32 %v1022_v23, %v998_v61 }
 0x640   :  { %v1031_v27 = vadd.f32 %v1029_v24, %v1023_v26  ;;  %v1033_v30 = vmul.f32 %v1023_v26, %v1000_v63 }
 0x641   :  { %1954 = vrcp.f32 %v1030_v25 }
 0x642   :  { %1956 = vrcp.f32 %v1031_v27 }
 0x64b   :  { %v1955_v29 = vpop.eup %1954 }
 0x64c   :  { %v1957_v31 = vpop.eup %1956  ;;  %v1036_v32 = vmul.f32 %v1955_v29, %v1032_v28 }
 0x64d   :  { %v1037_v33 = vmul.f32 %v1957_v31, %v1033_v30 }
 0x64e   :  { %v1038_v35 = vpack.c.bf16 %v1036_v32, %v1036_v32  ;;  %v1619_v32 = vld [vmem:[%s2309_s10] ss:$0 sm:$0xff] }
 0x64f   :  { %v1039_v34 = vpack.c.bf16 %v1037_v33, %v1037_v33 }
 0x651   :  { %1278 = vmatprep.mubr.bf16.mxu0 %v1039_v34 }
 0x652   :  { %1279 = vmatmul.mubr.bf16.vlgmr.msra.gmra.mrb[12].mxu0 %v1038_v35 }
 0x725   :  { %v1280_v57 = vpop.f32.mrb[12].mxu0 }
 0x726   :  { %v1281_v58 = vadd.f32 %v1280_v57, %v1079_v55  ;;  %v1282_v59 = vpop.f32.mrb[13].mxu0 }
 0x727   :  { %v1283_v60 = vadd.f32 %v1282_v59, %v1083_v56  ;;  %v1284_v61 = vpop.f32.mrb[14].mxu0 }
 0x728   :  { %v1287_v62 = vand.u32 2147483647, %v1281_v58  ;;  %v1285_v63 = vpop.f32.mrb[15].mxu0  ;;  %vm1295_vm10 = vcmp.ge.f32.partialorder %v1281_v58, 0.0 }
 0x729   :  { %v1288_v1 = vand.u32 2147483647, %v1283_v60  ;;  %vm1296_vm11 = vcmp.ge.f32.partialorder %v1283_v60, 0.0 }
 0x72a   :  { %v1289_v2 = vsub.f32 0.0, %v1287_v62 }
 0x72b   :  { %v1290_v3 = vsub.f32 0.0, %v1288_v1 }
 0x72c   :  { %v1291_v4 = vmul.f32 1.442695, %v1289_v2 }
 0x72d   :  { %v1293_v5 = vmul.f32 1.442695, %v1290_v3 }
 0x72e   :  { %1958 = vpow2.f32 %v1291_v4 }
 0x72f   :  { %1960 = vpow2.f32 %v1293_v5 }
 0x738   :  { %v1959_v6 = vpop.eup %1958 }
 0x739   :  { %v1961_v7 = vpop.eup %1960  ;;  %v1297_v8 = vmul.f32 2.0, %v1959_v6  ;;  %v1301_v52 = vadd.f32 2.0, %v1959_v6  ;;  %v1307_v9 = vmul.f32 %v1959_v6, %v1959_v6 }
 0x73a   :  { %v1298_v54 = vmul.f32 2.0, %v1961_v7  ;;  %v1302_v10 = vadd.f32 2.0, %v1961_v7  ;;  %v1308_v11 = vmul.f32 %v1961_v7, %v1961_v7 }
 0x73b   :  { %v1299_v12 = vadd.f32 1.0, %v1297_v8  ;;  %v1303_v13 = vmul.f32 %v1959_v6, %v1301_v52  ;;  %v1309_v14 = vsel %vm1295_vm10, %v1307_v9, 1.0 }
 0x73c   :  { %v1311_v15 = vmul.f32 2.0, %v1309_v14  ;;  %v1300_v16 = vadd.f32 1.0, %v1298_v54  ;;  %v1304_v17 = vmul.f32 %v1961_v7, %v1302_v10  ;;  %v1310_v18 = vsel %vm1296_vm11, %v1308_v11, 1.0 }
 0x73d   :  { %v1305_v19 = vsel %vm1295_vm10, %v1299_v12, %v1303_v13  ;;  %v1312_v20 = vmul.f32 2.0, %v1310_v18 }
 0x73e   :  { %v1313_v21 = vadd.f32 %v1311_v15, %v1305_v19  ;;  %v1306_v22 = vsel %vm1296_vm11, %v1300_v16, %v1304_v17  ;;  %v1315_v23 = vmul.f32 %v1305_v19, %v1281_v58 }
 0x73f   :  { %v1314_v0 = vadd.f32 %v1312_v20, %v1306_v22  ;;  %v1316_v25 = vmul.f32 %v1306_v22, %v1283_v60 }
 0x740   :  { %1962 = vrcp.f32 %v1313_v21 }
 0x741   :  { %1964 = vrcp.f32 %v1314_v0 }
 0x74a   :  { %v1963_v24 = vpop.eup %1962 }
 0x74b   :  { %v1965_v26 = vpop.eup %1964  ;;  %v1319_v27 = vmul.f32 %v1963_v24, %v1315_v23 }
 0x74c   :  { %v1320_v28 = vmul.f32 %v1965_v26, %v1316_v25 }
 0x74d   :  { %v1321_v30 = vpack.c.bf16 %v1319_v27, %v1319_v27 }
 0x74e   :  { %v1322_v29 = vpack.c.bf16 %v1320_v28, %v1320_v28 }
 0x750   :  { %1490 = vmatprep.mubr.bf16.mxu1 %v1322_v29 }
 0x751   :  { %1491 = vmatmul.mubr.bf16.vlgmr.msra.gmra.mrb[12].mxu1 %v1321_v30 }
 0x824   :  { %v1681_v31 = vpop.f32.mrb[12].mxu1 }
 0x825   :  { %v1682_v33 = vpop.f32.mrb[13].mxu1 }
 0x826   :  { %v1683_v34 = vadd.f32 %v1682_v33, %v1681_v31  ;;  %v1684_v35 = vpop.f32.mrb[14].mxu1 }
 0x827   :  { %v1685_v36 = vpop.f32.mrb[15].mxu1 }
 0x828   :  { %v1493_v37 = vadd.f32 %v1683_v34, %v1619_v32 }
 0x82a   :  { %1498 = vst [vmem:[%s2310_s11] sm:$0xff] %v1493_v37 }
 0x82b   :  { %1503 = vsyncpa [#allocation3], 1 }
 0x82c   :  { %1504 = vsyncpa [#allocation5], 1 }
 0x82d   :  { %1505 = vsyncpa [#allocation8], 1 }

</bundles_post_ra>
